<compile_context>
chip_gen: v5e
topology: v5e:2x2
jax: 0.10.0
libtpu: 0.0.40
codegen_flags: <defaults>
</compile_context>

<pallas_src>
import functools
import math

import jax
import jax.numpy as jnp
from jax.experimental import pallas as pl
from jax.experimental.pallas import tpu as pltpu


O_PAD = 128  # lane-dense padded width for the final fc output

_LAYER_PARAM_ORDER = (
    "wqkv", "bqkv", "wo", "bo",
    "ln1w", "ln1b", "w1", "b1", "w2", "b2", "ln2w", "ln2b",
)
_PARAMS_PER_LAYER = len(_LAYER_PARAM_ORDER)


# ----------------------------- kernel helpers -----------------------------

def _layernorm(x, w, b, eps=1e-5):
    # x: [N, E], w/b: [1, E]  (PyTorch LayerNorm: biased variance, eps=1e-5)
    mean = jnp.mean(x, axis=-1, keepdims=True)
    xc = x - mean
    var = jnp.mean(xc * xc, axis=-1, keepdims=True)
    return xc * jax.lax.rsqrt(var + eps) * w + b


def _make_fused_kernel(B, S, E, V_pad, nhead, num_layers):
    dh = E // nhead
    scale = 1.0 / math.sqrt(dh)
    n = B * S

    def kernel(*refs):
        ids_ref, emb_ref, pool_ref = refs[:3]
        fc_w_ref, fc_b_ref, o_ref = refs[-3], refs[-2], refs[-1]
        layer_refs = refs[3:-3]

        # ---- embedding lookup fused in-kernel as one-hot matmul (tiny vocab) ----
        # TODO(synk): for large vocab, replace the one-hot matmul with a DMA row gather.
        ids = ids_ref[...]                                               # [B*S, 1] int32
        iota = jax.lax.broadcasted_iota(jnp.int32, (n, V_pad), 1)        # [B*S, V_pad]
        onehot = (iota == ids).astype(jnp.float32)
        xf = jnp.dot(onehot, emb_ref[...],
                     preferred_element_type=jnp.float32)                 # [B*S, E]

        for l in range(num_layers):
            (wqkv, bqkv, wo, bo, ln1w, ln1b,
             w1, b1, w2, b2, ln2w, ln2b) = layer_refs[
                l * _PARAMS_PER_LAYER:(l + 1) * _PARAMS_PER_LAYER]

            # ---- fused QKV: one wide MXU pass over the whole [B*S, E] slab ----
            qkv = jnp.dot(xf, wqkv[...],
                          preferred_element_type=jnp.float32) + bqkv[...]   # [B*S, 3E]

            wo_all = wo[...]                      # [E, E], rows grouped by head (hoisted)
            attn = None
            for h in range(nhead):                # static; fully unrolled, scheduler interleaves
                # static lane slices + sublane-only reshapes (no transposes / broadcasts)
                q = qkv[:, h * dh:(h + 1) * dh].reshape(B, S, dh)
                k = qkv[:, E + h * dh:E + (h + 1) * dh].reshape(B, S, dh)
                v = qkv[:, 2 * E + h * dh:2 * E + (h + 1) * dh].reshape(B, S, dh)

                s = jnp.einsum("bsd,btd->bst", q, k,
                               preferred_element_type=jnp.float32) * scale   # [B, S, S]
                s = s - jnp.max(s, axis=-1, keepdims=True)
                p = jnp.exp(s)
                p = p / jnp.sum(p, axis=-1, keepdims=True)     # exact divide (PyTorch parity)

                ctx = jnp.einsum("bst,btd->bsd", p, v,
                                 preferred_element_type=jnp.float32)         # [B, S, dh]
                # head-out projection; head reduction accumulates across these dots
                contrib = jnp.dot(ctx.reshape(n, dh),
                                  wo_all[h * dh:(h + 1) * dh, :],
                                  preferred_element_type=jnp.float32)        # [B*S, E]
                attn = contrib if attn is None else attn + contrib
            attn = attn + bo[...]

            # residual + LN1 (dropout == identity in eval mode)
            y = _layernorm(xf + attn, ln1w[...], ln1b[...])

            # feed-forward: Linear -> ReLU -> Linear (dropouts == identity)
            h1 = jnp.maximum(
                jnp.dot(y, w1[...], preferred_element_type=jnp.float32) + b1[...], 0.0)
            ff = jnp.dot(h1, w2[...], preferred_element_type=jnp.float32) + b2[...]
            xf = _layernorm(y + ff, ln2w[...], ln2b[...])

        # ---- mean-pool as a matmul + final fc (lane-dense padded output) ----
        pooled = jnp.dot(pool_ref[...], xf,
                         preferred_element_type=jnp.float32)                 # [B, E]
        o_ref[...] = jnp.dot(pooled, fc_w_ref[...],
                             preferred_element_type=jnp.float32) + fc_b_ref[...]

    return kernel


# ----------------------------- model -----------------------------

def init_params(key, vocab_size, embed_dim, nhead, num_layers, hidden_dim, output_dim):
    def nrm(k, shape, scale=0.02):
        return (scale * jax.random.normal(k, shape)).astype(jnp.float32)

    keys = jax.random.split(key, 2 + 4 * num_layers)
    params = {"embedding": nrm(keys[0], (vocab_size, embed_dim), 0.1), "layers": []}
    idx = 1
    for _ in range(num_layers):
        kqkv, ko, k1, k2 = keys[idx:idx + 4]
        idx += 4
        params["layers"].append({
            "wqkv": nrm(kqkv, (embed_dim, 3 * embed_dim)),  # in_proj_weight.T
            "bqkv": jnp.zeros((1, 3 * embed_dim), jnp.float32),
            "wo":   nrm(ko, (embed_dim, embed_dim)),        # out_proj.weight.T
            "bo":   jnp.zeros((1, embed_dim), jnp.float32),
            "ln1w": jnp.ones((1, embed_dim), jnp.float32),
            "ln1b": jnp.zeros((1, embed_dim), jnp.float32),
            "w1":   nrm(k1, (embed_dim, hidden_dim)),
            "b1":   jnp.zeros((1, hidden_dim), jnp.float32),
            "w2":   nrm(k2, (hidden_dim, embed_dim)),
            "b2":   jnp.zeros((1, embed_dim), jnp.float32),
            "ln2w": jnp.ones((1, embed_dim), jnp.float32),
            "ln2b": jnp.zeros((1, embed_dim), jnp.float32),
        })
    params["fc_w"] = nrm(keys[idx], (embed_dim, output_dim))
    params["fc_b"] = jnp.zeros((1, output_dim), jnp.float32)
    return params


def transformer_model_forward(params, text, nhead):
    B, S = text.shape
    V, E = params["embedding"].shape
    O = params["fc_w"].shape[1]
    num_layers = len(params["layers"])

    # vocab padded to a lane-friendly multiple of 128 for the in-kernel one-hot matmul
    V_pad = pl.cdiv(V, 128) * 128
    emb_pad = jnp.zeros((V_pad, E), jnp.float32).at[:V].set(params["embedding"])

    ids = text.reshape(B * S, 1).astype(jnp.int32)

    # constant block-averaging matrix: pooled = pool @ xf  (mean over seq, on the MXU)
    pool = jnp.repeat(jnp.eye(B, dtype=jnp.float32), S, axis=1) * (1.0 / S)   # [B, B*S]

    # lane-dense padded fc weights (real columns first, zeros after)
    fc_w_pad = jnp.zeros((E, O_PAD), jnp.float32).at[:, :O].set(params["fc_w"])
    fc_b_pad = jnp.zeros((1, O_PAD), jnp.float32).at[:, :O].set(params["fc_b"])

    flat = []
    for lp in params["layers"]:
        flat.extend(lp[name] for name in _LAYER_PARAM_ORDER)

    args = (ids, emb_pad, pool, *flat, fc_w_pad, fc_b_pad)
    out_pad = pl.pallas_call(
        _make_fused_kernel(B, S, E, V_pad, nhead, num_layers),
        out_shape=jax.ShapeDtypeStruct((B, O_PAD), jnp.float32),
        in_specs=[pl.BlockSpec(memory_space=pltpu.MemorySpace.VMEM) for _ in args],
        out_specs=pl.BlockSpec(memory_space=pltpu.MemorySpace.VMEM),
        compiler_params=pltpu.CompilerParams(vmem_limit_bytes=32 * 1024 * 1024),
    )(*args)
    return out_pad[:, :O]                                   # [B, output_dim]


# ----------------------------- main -----------------------------

if __name__ == "__main__":
    VOCAB = 50
    EMBED = 32        # embed_dim (divisible by nhead)
    NHEAD = 4
    NUM_LAYERS = 2
    HIDDEN = 64       # dim_feedforward
    OUTPUT = 3
    B, S = 2, 8

    key = jax.random.PRNGKey(0)
    kp, kt = jax.random.split(key)
    params = init_params(kp, VOCAB, EMBED, NHEAD, NUM_LAYERS, HIDDEN, OUTPUT)
    text = jax.random.randint(kt, (B, S), 0, VOCAB, dtype=jnp.int32)

    fwd = jax.jit(functools.partial(transformer_model_forward, nhead=NHEAD))
    out = fwd(params, text)
    jax.block_until_ready(out)
    assert out.shape == (B, OUTPUT) and out.dtype == jnp.float32
    print("KERNEL_OK")
</pallas_src>

<mosaic_0001>
module attributes {stable_mosaic.version = 11 : i64} {
  func.func @kernel(%arg0: memref<16x1xi32, #tpu.memory_space<vmem>>, %arg1: memref<128x32xf32, #tpu.memory_space<vmem>>, %arg2: memref<2x16xf32, #tpu.memory_space<vmem>>, %arg3: memref<32x96xf32, #tpu.memory_space<vmem>>, %arg4: memref<1x96xf32, #tpu.memory_space<vmem>>, %arg5: memref<32x32xf32, #tpu.memory_space<vmem>>, %arg6: memref<1x32xf32, #tpu.memory_space<vmem>>, %arg7: memref<1x32xf32, #tpu.memory_space<vmem>>, %arg8: memref<1x32xf32, #tpu.memory_space<vmem>>, %arg9: memref<32x64xf32, #tpu.memory_space<vmem>>, %arg10: memref<1x64xf32, #tpu.memory_space<vmem>>, %arg11: memref<64x32xf32, #tpu.memory_space<vmem>>, %arg12: memref<1x32xf32, #tpu.memory_space<vmem>>, %arg13: memref<1x32xf32, #tpu.memory_space<vmem>>, %arg14: memref<1x32xf32, #tpu.memory_space<vmem>>, %arg15: memref<32x96xf32, #tpu.memory_space<vmem>>, %arg16: memref<1x96xf32, #tpu.memory_space<vmem>>, %arg17: memref<32x32xf32, #tpu.memory_space<vmem>>, %arg18: memref<1x32xf32, #tpu.memory_space<vmem>>, %arg19: memref<1x32xf32, #tpu.memory_space<vmem>>, %arg20: memref<1x32xf32, #tpu.memory_space<vmem>>, %arg21: memref<32x64xf32, #tpu.memory_space<vmem>>, %arg22: memref<1x64xf32, #tpu.memory_space<vmem>>, %arg23: memref<64x32xf32, #tpu.memory_space<vmem>>, %arg24: memref<1x32xf32, #tpu.memory_space<vmem>>, %arg25: memref<1x32xf32, #tpu.memory_space<vmem>>, %arg26: memref<1x32xf32, #tpu.memory_space<vmem>>, %arg27: memref<32x128xf32, #tpu.memory_space<vmem>>, %arg28: memref<1x128xf32, #tpu.memory_space<vmem>>, %arg29: memref<2x128xf32, #tpu.memory_space<vmem>>) attributes {dimension_semantics = [], scalar_prefetch = 0 : i64, scratch_operands = 0 : i64, tpu.core_type = #tpu.core_type<tc>} {
    %c0 = arith.constant 0 : index
    %c0_0 = arith.constant 0 : index
    %0 = vector.load %arg0[%c0, %c0_0] : memref<16x1xi32, #tpu.memory_space<vmem>>, vector<16x1xi32>
    %1 = tpu.iota {dimensions = array<i32: 1>} : vector<16x128xi32>
    %2 = vector.broadcast %0 : vector<16x1xi32> to vector<16x128xi32>
    %3 = arith.cmpi eq, %1, %2 : vector<16x128xi32>
    %4 = arith.extui %3 : vector<16x128xi1> to vector<16x128xi32>
    %5 = arith.sitofp %4 : vector<16x128xi32> to vector<16x128xf32>
    %c0_1 = arith.constant 0 : index
    %c0_2 = arith.constant 0 : index
    %6 = vector.load %arg1[%c0_1, %c0_2] : memref<128x32xf32, #tpu.memory_space<vmem>>, vector<128x32xf32>
    %cst = arith.constant dense<0.000000e+00> : vector<16x32xf32>
    %7 = tpu.matmul %5, %6, %cst {dimension_numbers = #tpu.dot_dimension_numbers<[1], [0], [0], [1], [0, 0, 1, 1], [], []>} : vector<16x128xf32>, vector<128x32xf32>, vector<16x32xf32> -> vector<16x32xf32>
    %c0_3 = arith.constant 0 : index
    %c0_4 = arith.constant 0 : index
    %8 = vector.load %arg3[%c0_3, %c0_4] : memref<32x96xf32, #tpu.memory_space<vmem>>, vector<32x96xf32>
    %cst_5 = arith.constant dense<0.000000e+00> : vector<16x96xf32>
    %9 = tpu.matmul %7, %8, %cst_5 {dimension_numbers = #tpu.dot_dimension_numbers<[1], [0], [0], [1], [0, 0, 1, 1], [], []>} : vector<16x32xf32>, vector<32x96xf32>, vector<16x96xf32> -> vector<16x96xf32>
    %c0_6 = arith.constant 0 : index
    %c0_7 = arith.constant 0 : index
    %10 = vector.load %arg4[%c0_6, %c0_7] : memref<1x96xf32, #tpu.memory_space<vmem>>, vector<1x96xf32>
    %11 = vector.broadcast %10 : vector<1x96xf32> to vector<16x96xf32>
    %12 = arith.addf %9, %11 : vector<16x96xf32>
    %c0_8 = arith.constant 0 : index
    %c0_9 = arith.constant 0 : index
    %13 = vector.load %arg5[%c0_8, %c0_9] : memref<32x32xf32, #tpu.memory_space<vmem>>, vector<32x32xf32>
    %14 = vector.extract_strided_slice %12 {offsets = [0, 0], sizes = [16, 8], strides = [1, 1]} : vector<16x96xf32> to vector<16x8xf32>
    %15 = vector.shape_cast %14 : vector<16x8xf32> to vector<2x8x8xf32>
    %16 = vector.extract_strided_slice %12 {offsets = [0, 32], sizes = [16, 8], strides = [1, 1]} : vector<16x96xf32> to vector<16x8xf32>
    %17 = vector.shape_cast %16 : vector<16x8xf32> to vector<2x8x8xf32>
    %18 = vector.extract_strided_slice %12 {offsets = [0, 64], sizes = [16, 8], strides = [1, 1]} : vector<16x96xf32> to vector<16x8xf32>
    %19 = vector.shape_cast %18 : vector<16x8xf32> to vector<2x8x8xf32>
    "tpu.trace_start"() <{level = 10 : i32, message = "bsd,btd->bst"}> : () -> ()
    %cst_10 = arith.constant dense<0.000000e+00> : vector<2x8x8xf32>
    %20 = tpu.matmul %15, %17, %cst_10 {dimension_numbers = #tpu.dot_dimension_numbers<[2], [2], [1], [1], [0, 0, 0, 1, 1, 1], [0], [0]>} : vector<2x8x8xf32>, vector<2x8x8xf32>, vector<2x8x8xf32> -> vector<2x8x8xf32>
    "tpu.trace_stop"() : () -> ()
    %cst_11 = arith.constant 0.353553385 : f32
    %21 = vector.broadcast %cst_11 : f32 to vector<2x8x8xf32>
    %22 = arith.mulf %20, %21 : vector<2x8x8xf32>
    %cst_12 = arith.constant dense<0xFF800000> : vector<2x8xf32>
    %23 = vector.multi_reduction <maximumf>, %22, %cst_12 [2] : vector<2x8x8xf32> to vector<2x8xf32>
    %24 = vector.shape_cast %23 : vector<2x8xf32> to vector<2x8x1xf32>
    %25 = vector.broadcast %24 : vector<2x8x1xf32> to vector<2x8x8xf32>
    %26 = arith.subf %22, %25 : vector<2x8x8xf32>
    %27 = math.exp %26 : vector<2x8x8xf32>
    %cst_13 = arith.constant dense<0.000000e+00> : vector<2x8xf32>
    %28 = vector.multi_reduction <add>, %27, %cst_13 [2] : vector<2x8x8xf32> to vector<2x8xf32>
    %29 = vector.shape_cast %28 : vector<2x8xf32> to vector<2x8x1xf32>
    %30 = vector.broadcast %29 : vector<2x8x1xf32> to vector<2x8x8xf32>
    %31 = arith.divf %27, %30 : vector<2x8x8xf32>
    "tpu.trace_start"() <{level = 10 : i32, message = "bst,btd->bsd"}> : () -> ()
    %cst_14 = arith.constant dense<0.000000e+00> : vector<2x8x8xf32>
    %32 = tpu.matmul %31, %19, %cst_14 {dimension_numbers = #tpu.dot_dimension_numbers<[2], [1], [1], [2], [0, 0, 0, 1, 1, 2], [0], [0]>} : vector<2x8x8xf32>, vector<2x8x8xf32>, vector<2x8x8xf32> -> vector<2x8x8xf32>
    "tpu.trace_stop"() : () -> ()
    %33 = vector.shape_cast %32 : vector<2x8x8xf32> to vector<16x8xf32>
    %34 = vector.extract_strided_slice %13 {offsets = [0, 0], sizes = [8, 32], strides = [1, 1]} : vector<32x32xf32> to vector<8x32xf32>
    %cst_15 = arith.constant dense<0.000000e+00> : vector<16x32xf32>
    %35 = tpu.matmul %33, %34, %cst_15 {dimension_numbers = #tpu.dot_dimension_numbers<[1], [0], [0], [1], [0, 0, 1, 1], [], []>} : vector<16x8xf32>, vector<8x32xf32>, vector<16x32xf32> -> vector<16x32xf32>
    %36 = vector.extract_strided_slice %12 {offsets = [0, 8], sizes = [16, 8], strides = [1, 1]} : vector<16x96xf32> to vector<16x8xf32>
    %37 = vector.shape_cast %36 : vector<16x8xf32> to vector<2x8x8xf32>
    %38 = vector.extract_strided_slice %12 {offsets = [0, 40], sizes = [16, 8], strides = [1, 1]} : vector<16x96xf32> to vector<16x8xf32>
    %39 = vector.shape_cast %38 : vector<16x8xf32> to vector<2x8x8xf32>
    %40 = vector.extract_strided_slice %12 {offsets = [0, 72], sizes = [16, 8], strides = [1, 1]} : vector<16x96xf32> to vector<16x8xf32>
    %41 = vector.shape_cast %40 : vector<16x8xf32> to vector<2x8x8xf32>
    "tpu.trace_start"() <{level = 10 : i32, message = "bsd,btd->bst"}> : () -> ()
    %cst_16 = arith.constant dense<0.000000e+00> : vector<2x8x8xf32>
    %42 = tpu.matmul %37, %39, %cst_16 {dimension_numbers = #tpu.dot_dimension_numbers<[2], [2], [1], [1], [0, 0, 0, 1, 1, 1], [0], [0]>} : vector<2x8x8xf32>, vector<2x8x8xf32>, vector<2x8x8xf32> -> vector<2x8x8xf32>
    "tpu.trace_stop"() : () -> ()
    %cst_17 = arith.constant 0.353553385 : f32
    %43 = vector.broadcast %cst_17 : f32 to vector<2x8x8xf32>
    %44 = arith.mulf %42, %43 : vector<2x8x8xf32>
    %cst_18 = arith.constant dense<0xFF800000> : vector<2x8xf32>
    %45 = vector.multi_reduction <maximumf>, %44, %cst_18 [2] : vector<2x8x8xf32> to vector<2x8xf32>
    %46 = vector.shape_cast %45 : vector<2x8xf32> to vector<2x8x1xf32>
    %47 = vector.broadcast %46 : vector<2x8x1xf32> to vector<2x8x8xf32>
    %48 = arith.subf %44, %47 : vector<2x8x8xf32>
    %49 = math.exp %48 : vector<2x8x8xf32>
    %cst_19 = arith.constant dense<0.000000e+00> : vector<2x8xf32>
    %50 = vector.multi_reduction <add>, %49, %cst_19 [2] : vector<2x8x8xf32> to vector<2x8xf32>
    %51 = vector.shape_cast %50 : vector<2x8xf32> to vector<2x8x1xf32>
    %52 = vector.broadcast %51 : vector<2x8x1xf32> to vector<2x8x8xf32>
    %53 = arith.divf %49, %52 : vector<2x8x8xf32>
    "tpu.trace_start"() <{level = 10 : i32, message = "bst,btd->bsd"}> : () -> ()
    %cst_20 = arith.constant dense<0.000000e+00> : vector<2x8x8xf32>
    %54 = tpu.matmul %53, %41, %cst_20 {dimension_numbers = #tpu.dot_dimension_numbers<[2], [1], [1], [2], [0, 0, 0, 1, 1, 2], [0], [0]>} : vector<2x8x8xf32>, vector<2x8x8xf32>, vector<2x8x8xf32> -> vector<2x8x8xf32>
    "tpu.trace_stop"() : () -> ()
    %55 = vector.shape_cast %54 : vector<2x8x8xf32> to vector<16x8xf32>
    %56 = vector.extract_strided_slice %13 {offsets = [8, 0], sizes = [8, 32], strides = [1, 1]} : vector<32x32xf32> to vector<8x32xf32>
    %cst_21 = arith.constant dense<0.000000e+00> : vector<16x32xf32>
    %57 = tpu.matmul %55, %56, %cst_21 {dimension_numbers = #tpu.dot_dimension_numbers<[1], [0], [0], [1], [0, 0, 1, 1], [], []>} : vector<16x8xf32>, vector<8x32xf32>, vector<16x32xf32> -> vector<16x32xf32>
    %58 = arith.addf %35, %57 : vector<16x32xf32>
    %59 = vector.extract_strided_slice %12 {offsets = [0, 16], sizes = [16, 8], strides = [1, 1]} : vector<16x96xf32> to vector<16x8xf32>
    %60 = vector.shape_cast %59 : vector<16x8xf32> to vector<2x8x8xf32>
    %61 = vector.extract_strided_slice %12 {offsets = [0, 48], sizes = [16, 8], strides = [1, 1]} : vector<16x96xf32> to vector<16x8xf32>
    %62 = vector.shape_cast %61 : vector<16x8xf32> to vector<2x8x8xf32>
    %63 = vector.extract_strided_slice %12 {offsets = [0, 80], sizes = [16, 8], strides = [1, 1]} : vector<16x96xf32> to vector<16x8xf32>
    %64 = vector.shape_cast %63 : vector<16x8xf32> to vector<2x8x8xf32>
    "tpu.trace_start"() <{level = 10 : i32, message = "bsd,btd->bst"}> : () -> ()
    %cst_22 = arith.constant dense<0.000000e+00> : vector<2x8x8xf32>
    %65 = tpu.matmul %60, %62, %cst_22 {dimension_numbers = #tpu.dot_dimension_numbers<[2], [2], [1], [1], [0, 0, 0, 1, 1, 1], [0], [0]>} : vector<2x8x8xf32>, vector<2x8x8xf32>, vector<2x8x8xf32> -> vector<2x8x8xf32>
    "tpu.trace_stop"() : () -> ()
    %cst_23 = arith.constant 0.353553385 : f32
    %66 = vector.broadcast %cst_23 : f32 to vector<2x8x8xf32>
    %67 = arith.mulf %65, %66 : vector<2x8x8xf32>
    %cst_24 = arith.constant dense<0xFF800000> : vector<2x8xf32>
    %68 = vector.multi_reduction <maximumf>, %67, %cst_24 [2] : vector<2x8x8xf32> to vector<2x8xf32>
    %69 = vector.shape_cast %68 : vector<2x8xf32> to vector<2x8x1xf32>
    %70 = vector.broadcast %69 : vector<2x8x1xf32> to vector<2x8x8xf32>
    %71 = arith.subf %67, %70 : vector<2x8x8xf32>
    %72 = math.exp %71 : vector<2x8x8xf32>
    %cst_25 = arith.constant dense<0.000000e+00> : vector<2x8xf32>
    %73 = vector.multi_reduction <add>, %72, %cst_25 [2] : vector<2x8x8xf32> to vector<2x8xf32>
    %74 = vector.shape_cast %73 : vector<2x8xf32> to vector<2x8x1xf32>
    %75 = vector.broadcast %74 : vector<2x8x1xf32> to vector<2x8x8xf32>
    %76 = arith.divf %72, %75 : vector<2x8x8xf32>
    "tpu.trace_start"() <{level = 10 : i32, message = "bst,btd->bsd"}> : () -> ()
    %cst_26 = arith.constant dense<0.000000e+00> : vector<2x8x8xf32>
    %77 = tpu.matmul %76, %64, %cst_26 {dimension_numbers = #tpu.dot_dimension_numbers<[2], [1], [1], [2], [0, 0, 0, 1, 1, 2], [0], [0]>} : vector<2x8x8xf32>, vector<2x8x8xf32>, vector<2x8x8xf32> -> vector<2x8x8xf32>
    "tpu.trace_stop"() : () -> ()
    %78 = vector.shape_cast %77 : vector<2x8x8xf32> to vector<16x8xf32>
    %79 = vector.extract_strided_slice %13 {offsets = [16, 0], sizes = [8, 32], strides = [1, 1]} : vector<32x32xf32> to vector<8x32xf32>
    %cst_27 = arith.constant dense<0.000000e+00> : vector<16x32xf32>
    %80 = tpu.matmul %78, %79, %cst_27 {dimension_numbers = #tpu.dot_dimension_numbers<[1], [0], [0], [1], [0, 0, 1, 1], [], []>} : vector<16x8xf32>, vector<8x32xf32>, vector<16x32xf32> -> vector<16x32xf32>
    %81 = arith.addf %58, %80 : vector<16x32xf32>
    %82 = vector.extract_strided_slice %12 {offsets = [0, 24], sizes = [16, 8], strides = [1, 1]} : vector<16x96xf32> to vector<16x8xf32>
    %83 = vector.shape_cast %82 : vector<16x8xf32> to vector<2x8x8xf32>
    %84 = vector.extract_strided_slice %12 {offsets = [0, 56], sizes = [16, 8], strides = [1, 1]} : vector<16x96xf32> to vector<16x8xf32>
    %85 = vector.shape_cast %84 : vector<16x8xf32> to vector<2x8x8xf32>
    %86 = vector.extract_strided_slice %12 {offsets = [0, 88], sizes = [16, 8], strides = [1, 1]} : vector<16x96xf32> to vector<16x8xf32>
    %87 = vector.shape_cast %86 : vector<16x8xf32> to vector<2x8x8xf32>
    "tpu.trace_start"() <{level = 10 : i32, message = "bsd,btd->bst"}> : () -> ()
    %cst_28 = arith.constant dense<0.000000e+00> : vector<2x8x8xf32>
    %88 = tpu.matmul %83, %85, %cst_28 {dimension_numbers = #tpu.dot_dimension_numbers<[2], [2], [1], [1], [0, 0, 0, 1, 1, 1], [0], [0]>} : vector<2x8x8xf32>, vector<2x8x8xf32>, vector<2x8x8xf32> -> vector<2x8x8xf32>
    "tpu.trace_stop"() : () -> ()
    %cst_29 = arith.constant 0.353553385 : f32
    %89 = vector.broadcast %cst_29 : f32 to vector<2x8x8xf32>
    %90 = arith.mulf %88, %89 : vector<2x8x8xf32>
    %cst_30 = arith.constant dense<0xFF800000> : vector<2x8xf32>
    %91 = vector.multi_reduction <maximumf>, %90, %cst_30 [2] : vector<2x8x8xf32> to vector<2x8xf32>
    %92 = vector.shape_cast %91 : vector<2x8xf32> to vector<2x8x1xf32>
    %93 = vector.broadcast %92 : vector<2x8x1xf32> to vector<2x8x8xf32>
    %94 = arith.subf %90, %93 : vector<2x8x8xf32>
    %95 = math.exp %94 : vector<2x8x8xf32>
    %cst_31 = arith.constant dense<0.000000e+00> : vector<2x8xf32>
    %96 = vector.multi_reduction <add>, %95, %cst_31 [2] : vector<2x8x8xf32> to vector<2x8xf32>
    %97 = vector.shape_cast %96 : vector<2x8xf32> to vector<2x8x1xf32>
    %98 = vector.broadcast %97 : vector<2x8x1xf32> to vector<2x8x8xf32>
    %99 = arith.divf %95, %98 : vector<2x8x8xf32>
    "tpu.trace_start"() <{level = 10 : i32, message = "bst,btd->bsd"}> : () -> ()
    %cst_32 = arith.constant dense<0.000000e+00> : vector<2x8x8xf32>
    %100 = tpu.matmul %99, %87, %cst_32 {dimension_numbers = #tpu.dot_dimension_numbers<[2], [1], [1], [2], [0, 0, 0, 1, 1, 2], [0], [0]>} : vector<2x8x8xf32>, vector<2x8x8xf32>, vector<2x8x8xf32> -> vector<2x8x8xf32>
    "tpu.trace_stop"() : () -> ()
    %101 = vector.shape_cast %100 : vector<2x8x8xf32> to vector<16x8xf32>
    %102 = vector.extract_strided_slice %13 {offsets = [24, 0], sizes = [8, 32], strides = [1, 1]} : vector<32x32xf32> to vector<8x32xf32>
    %cst_33 = arith.constant dense<0.000000e+00> : vector<16x32xf32>
    %103 = tpu.matmul %101, %102, %cst_33 {dimension_numbers = #tpu.dot_dimension_numbers<[1], [0], [0], [1], [0, 0, 1, 1], [], []>} : vector<16x8xf32>, vector<8x32xf32>, vector<16x32xf32> -> vector<16x32xf32>
    %104 = arith.addf %81, %103 : vector<16x32xf32>
    %c0_34 = arith.constant 0 : index
    %c0_35 = arith.constant 0 : index
    %105 = vector.load %arg6[%c0_34, %c0_35] : memref<1x32xf32, #tpu.memory_space<vmem>>, vector<1x32xf32>
    %106 = vector.broadcast %105 : vector<1x32xf32> to vector<16x32xf32>
    %107 = arith.addf %104, %106 : vector<16x32xf32>
    %108 = arith.addf %7, %107 : vector<16x32xf32>
    %c0_36 = arith.constant 0 : index
    %c0_37 = arith.constant 0 : index
    %109 = vector.load %arg7[%c0_36, %c0_37] : memref<1x32xf32, #tpu.memory_space<vmem>>, vector<1x32xf32>
    %c0_38 = arith.constant 0 : index
    %c0_39 = arith.constant 0 : index
    %110 = vector.load %arg8[%c0_38, %c0_39] : memref<1x32xf32, #tpu.memory_space<vmem>>, vector<1x32xf32>
    %cst_40 = arith.constant dense<0.000000e+00> : vector<16xf32>
    %111 = vector.multi_reduction <add>, %108, %cst_40 [1] : vector<16x32xf32> to vector<16xf32>
    %112 = vector.shape_cast %111 : vector<16xf32> to vector<16x1xf32>
    %cst_41 = arith.constant 3.200000e+01 : f32
    %113 = vector.broadcast %cst_41 : f32 to vector<16x1xf32>
    %114 = arith.divf %112, %113 : vector<16x1xf32>
    %115 = vector.broadcast %114 : vector<16x1xf32> to vector<16x32xf32>
    %116 = arith.subf %108, %115 : vector<16x32xf32>
    %117 = arith.mulf %116, %116 : vector<16x32xf32>
    %cst_42 = arith.constant dense<0.000000e+00> : vector<16xf32>
    %118 = vector.multi_reduction <add>, %117, %cst_42 [1] : vector<16x32xf32> to vector<16xf32>
    %119 = vector.shape_cast %118 : vector<16xf32> to vector<16x1xf32>
    %cst_43 = arith.constant 3.200000e+01 : f32
    %120 = vector.broadcast %cst_43 : f32 to vector<16x1xf32>
    %121 = arith.divf %119, %120 : vector<16x1xf32>
    %cst_44 = arith.constant 9.99999974E-6 : f32
    %122 = vector.broadcast %cst_44 : f32 to vector<16x1xf32>
    %123 = arith.addf %121, %122 : vector<16x1xf32>
    %124 = math.rsqrt %123 : vector<16x1xf32>
    %125 = vector.broadcast %124 : vector<16x1xf32> to vector<16x32xf32>
    %126 = arith.mulf %116, %125 : vector<16x32xf32>
    %127 = vector.broadcast %109 : vector<1x32xf32> to vector<16x32xf32>
    %128 = arith.mulf %126, %127 : vector<16x32xf32>
    %129 = vector.broadcast %110 : vector<1x32xf32> to vector<16x32xf32>
    %130 = arith.addf %128, %129 : vector<16x32xf32>
    %c0_45 = arith.constant 0 : index
    %c0_46 = arith.constant 0 : index
    %131 = vector.load %arg9[%c0_45, %c0_46] : memref<32x64xf32, #tpu.memory_space<vmem>>, vector<32x64xf32>
    %cst_47 = arith.constant dense<0.000000e+00> : vector<16x64xf32>
    %132 = tpu.matmul %130, %131, %cst_47 {dimension_numbers = #tpu.dot_dimension_numbers<[1], [0], [0], [1], [0, 0, 1, 1], [], []>} : vector<16x32xf32>, vector<32x64xf32>, vector<16x64xf32> -> vector<16x64xf32>
    %c0_48 = arith.constant 0 : index
    %c0_49 = arith.constant 0 : index
    %133 = vector.load %arg10[%c0_48, %c0_49] : memref<1x64xf32, #tpu.memory_space<vmem>>, vector<1x64xf32>
    %134 = vector.broadcast %133 : vector<1x64xf32> to vector<16x64xf32>
    %135 = arith.addf %132, %134 : vector<16x64xf32>
    %cst_50 = arith.constant 0.000000e+00 : f32
    %136 = vector.broadcast %cst_50 : f32 to vector<16x64xf32>
    %137 = arith.maximumf %135, %136 : vector<16x64xf32>
    %c0_51 = arith.constant 0 : index
    %c0_52 = arith.constant 0 : index
    %138 = vector.load %arg11[%c0_51, %c0_52] : memref<64x32xf32, #tpu.memory_space<vmem>>, vector<64x32xf32>
    %cst_53 = arith.constant dense<0.000000e+00> : vector<16x32xf32>
    %139 = tpu.matmul %137, %138, %cst_53 {dimension_numbers = #tpu.dot_dimension_numbers<[1], [0], [0], [1], [0, 0, 1, 1], [], []>} : vector<16x64xf32>, vector<64x32xf32>, vector<16x32xf32> -> vector<16x32xf32>
    %c0_54 = arith.constant 0 : index
    %c0_55 = arith.constant 0 : index
    %140 = vector.load %arg12[%c0_54, %c0_55] : memref<1x32xf32, #tpu.memory_space<vmem>>, vector<1x32xf32>
    %141 = vector.broadcast %140 : vector<1x32xf32> to vector<16x32xf32>
    %142 = arith.addf %139, %141 : vector<16x32xf32>
    %143 = arith.addf %130, %142 : vector<16x32xf32>
    %c0_56 = arith.constant 0 : index
    %c0_57 = arith.constant 0 : index
    %144 = vector.load %arg13[%c0_56, %c0_57] : memref<1x32xf32, #tpu.memory_space<vmem>>, vector<1x32xf32>
    %c0_58 = arith.constant 0 : index
    %c0_59 = arith.constant 0 : index
    %145 = vector.load %arg14[%c0_58, %c0_59] : memref<1x32xf32, #tpu.memory_space<vmem>>, vector<1x32xf32>
    %cst_60 = arith.constant dense<0.000000e+00> : vector<16xf32>
    %146 = vector.multi_reduction <add>, %143, %cst_60 [1] : vector<16x32xf32> to vector<16xf32>
    %147 = vector.shape_cast %146 : vector<16xf32> to vector<16x1xf32>
    %cst_61 = arith.constant 3.200000e+01 : f32
    %148 = vector.broadcast %cst_61 : f32 to vector<16x1xf32>
    %149 = arith.divf %147, %148 : vector<16x1xf32>
    %150 = vector.broadcast %149 : vector<16x1xf32> to vector<16x32xf32>
    %151 = arith.subf %143, %150 : vector<16x32xf32>
    %152 = arith.mulf %151, %151 : vector<16x32xf32>
    %cst_62 = arith.constant dense<0.000000e+00> : vector<16xf32>
    %153 = vector.multi_reduction <add>, %152, %cst_62 [1] : vector<16x32xf32> to vector<16xf32>
    %154 = vector.shape_cast %153 : vector<16xf32> to vector<16x1xf32>
    %cst_63 = arith.constant 3.200000e+01 : f32
    %155 = vector.broadcast %cst_63 : f32 to vector<16x1xf32>
    %156 = arith.divf %154, %155 : vector<16x1xf32>
    %cst_64 = arith.constant 9.99999974E-6 : f32
    %157 = vector.broadcast %cst_64 : f32 to vector<16x1xf32>
    %158 = arith.addf %156, %157 : vector<16x1xf32>
    %159 = math.rsqrt %158 : vector<16x1xf32>
    %160 = vector.broadcast %159 : vector<16x1xf32> to vector<16x32xf32>
    %161 = arith.mulf %151, %160 : vector<16x32xf32>
    %162 = vector.broadcast %144 : vector<1x32xf32> to vector<16x32xf32>
    %163 = arith.mulf %161, %162 : vector<16x32xf32>
    %164 = vector.broadcast %145 : vector<1x32xf32> to vector<16x32xf32>
    %165 = arith.addf %163, %164 : vector<16x32xf32>
    %c0_65 = arith.constant 0 : index
    %c0_66 = arith.constant 0 : index
    %166 = vector.load %arg15[%c0_65, %c0_66] : memref<32x96xf32, #tpu.memory_space<vmem>>, vector<32x96xf32>
    %cst_67 = arith.constant dense<0.000000e+00> : vector<16x96xf32>
    %167 = tpu.matmul %165, %166, %cst_67 {dimension_numbers = #tpu.dot_dimension_numbers<[1], [0], [0], [1], [0, 0, 1, 1], [], []>} : vector<16x32xf32>, vector<32x96xf32>, vector<16x96xf32> -> vector<16x96xf32>
    %c0_68 = arith.constant 0 : index
    %c0_69 = arith.constant 0 : index
    %168 = vector.load %arg16[%c0_68, %c0_69] : memref<1x96xf32, #tpu.memory_space<vmem>>, vector<1x96xf32>
    %169 = vector.broadcast %168 : vector<1x96xf32> to vector<16x96xf32>
    %170 = arith.addf %167, %169 : vector<16x96xf32>
    %c0_70 = arith.constant 0 : index
    %c0_71 = arith.constant 0 : index
    %171 = vector.load %arg17[%c0_70, %c0_71] : memref<32x32xf32, #tpu.memory_space<vmem>>, vector<32x32xf32>
    %172 = vector.extract_strided_slice %170 {offsets = [0, 0], sizes = [16, 8], strides = [1, 1]} : vector<16x96xf32> to vector<16x8xf32>
    %173 = vector.shape_cast %172 : vector<16x8xf32> to vector<2x8x8xf32>
    %174 = vector.extract_strided_slice %170 {offsets = [0, 32], sizes = [16, 8], strides = [1, 1]} : vector<16x96xf32> to vector<16x8xf32>
    %175 = vector.shape_cast %174 : vector<16x8xf32> to vector<2x8x8xf32>
    %176 = vector.extract_strided_slice %170 {offsets = [0, 64], sizes = [16, 8], strides = [1, 1]} : vector<16x96xf32> to vector<16x8xf32>
    %177 = vector.shape_cast %176 : vector<16x8xf32> to vector<2x8x8xf32>
    "tpu.trace_start"() <{level = 10 : i32, message = "bsd,btd->bst"}> : () -> ()
    %cst_72 = arith.constant dense<0.000000e+00> : vector<2x8x8xf32>
    %178 = tpu.matmul %173, %175, %cst_72 {dimension_numbers = #tpu.dot_dimension_numbers<[2], [2], [1], [1], [0, 0, 0, 1, 1, 1], [0], [0]>} : vector<2x8x8xf32>, vector<2x8x8xf32>, vector<2x8x8xf32> -> vector<2x8x8xf32>
    "tpu.trace_stop"() : () -> ()
    %cst_73 = arith.constant 0.353553385 : f32
    %179 = vector.broadcast %cst_73 : f32 to vector<2x8x8xf32>
    %180 = arith.mulf %178, %179 : vector<2x8x8xf32>
    %cst_74 = arith.constant dense<0xFF800000> : vector<2x8xf32>
    %181 = vector.multi_reduction <maximumf>, %180, %cst_74 [2] : vector<2x8x8xf32> to vector<2x8xf32>
    %182 = vector.shape_cast %181 : vector<2x8xf32> to vector<2x8x1xf32>
    %183 = vector.broadcast %182 : vector<2x8x1xf32> to vector<2x8x8xf32>
    %184 = arith.subf %180, %183 : vector<2x8x8xf32>
    %185 = math.exp %184 : vector<2x8x8xf32>
    %cst_75 = arith.constant dense<0.000000e+00> : vector<2x8xf32>
    %186 = vector.multi_reduction <add>, %185, %cst_75 [2] : vector<2x8x8xf32> to vector<2x8xf32>
    %187 = vector.shape_cast %186 : vector<2x8xf32> to vector<2x8x1xf32>
    %188 = vector.broadcast %187 : vector<2x8x1xf32> to vector<2x8x8xf32>
    %189 = arith.divf %185, %188 : vector<2x8x8xf32>
    "tpu.trace_start"() <{level = 10 : i32, message = "bst,btd->bsd"}> : () -> ()
    %cst_76 = arith.constant dense<0.000000e+00> : vector<2x8x8xf32>
    %190 = tpu.matmul %189, %177, %cst_76 {dimension_numbers = #tpu.dot_dimension_numbers<[2], [1], [1], [2], [0, 0, 0, 1, 1, 2], [0], [0]>} : vector<2x8x8xf32>, vector<2x8x8xf32>, vector<2x8x8xf32> -> vector<2x8x8xf32>
    "tpu.trace_stop"() : () -> ()
    %191 = vector.shape_cast %190 : vector<2x8x8xf32> to vector<16x8xf32>
    %192 = vector.extract_strided_slice %171 {offsets = [0, 0], sizes = [8, 32], strides = [1, 1]} : vector<32x32xf32> to vector<8x32xf32>
    %cst_77 = arith.constant dense<0.000000e+00> : vector<16x32xf32>
    %193 = tpu.matmul %191, %192, %cst_77 {dimension_numbers = #tpu.dot_dimension_numbers<[1], [0], [0], [1], [0, 0, 1, 1], [], []>} : vector<16x8xf32>, vector<8x32xf32>, vector<16x32xf32> -> vector<16x32xf32>
    %194 = vector.extract_strided_slice %170 {offsets = [0, 8], sizes = [16, 8], strides = [1, 1]} : vector<16x96xf32> to vector<16x8xf32>
    %195 = vector.shape_cast %194 : vector<16x8xf32> to vector<2x8x8xf32>
    %196 = vector.extract_strided_slice %170 {offsets = [0, 40], sizes = [16, 8], strides = [1, 1]} : vector<16x96xf32> to vector<16x8xf32>
    %197 = vector.shape_cast %196 : vector<16x8xf32> to vector<2x8x8xf32>
    %198 = vector.extract_strided_slice %170 {offsets = [0, 72], sizes = [16, 8], strides = [1, 1]} : vector<16x96xf32> to vector<16x8xf32>
    %199 = vector.shape_cast %198 : vector<16x8xf32> to vector<2x8x8xf32>
    "tpu.trace_start"() <{level = 10 : i32, message = "bsd,btd->bst"}> : () -> ()
    %cst_78 = arith.constant dense<0.000000e+00> : vector<2x8x8xf32>
    %200 = tpu.matmul %195, %197, %cst_78 {dimension_numbers = #tpu.dot_dimension_numbers<[2], [2], [1], [1], [0, 0, 0, 1, 1, 1], [0], [0]>} : vector<2x8x8xf32>, vector<2x8x8xf32>, vector<2x8x8xf32> -> vector<2x8x8xf32>
    "tpu.trace_stop"() : () -> ()
    %cst_79 = arith.constant 0.353553385 : f32
    %201 = vector.broadcast %cst_79 : f32 to vector<2x8x8xf32>
    %202 = arith.mulf %200, %201 : vector<2x8x8xf32>
    %cst_80 = arith.constant dense<0xFF800000> : vector<2x8xf32>
    %203 = vector.multi_reduction <maximumf>, %202, %cst_80 [2] : vector<2x8x8xf32> to vector<2x8xf32>
    %204 = vector.shape_cast %203 : vector<2x8xf32> to vector<2x8x1xf32>
    %205 = vector.broadcast %204 : vector<2x8x1xf32> to vector<2x8x8xf32>
    %206 = arith.subf %202, %205 : vector<2x8x8xf32>
    %207 = math.exp %206 : vector<2x8x8xf32>
    %cst_81 = arith.constant dense<0.000000e+00> : vector<2x8xf32>
    %208 = vector.multi_reduction <add>, %207, %cst_81 [2] : vector<2x8x8xf32> to vector<2x8xf32>
    %209 = vector.shape_cast %208 : vector<2x8xf32> to vector<2x8x1xf32>
    %210 = vector.broadcast %209 : vector<2x8x1xf32> to vector<2x8x8xf32>
    %211 = arith.divf %207, %210 : vector<2x8x8xf32>
    "tpu.trace_start"() <{level = 10 : i32, message = "bst,btd->bsd"}> : () -> ()
    %cst_82 = arith.constant dense<0.000000e+00> : vector<2x8x8xf32>
    %212 = tpu.matmul %211, %199, %cst_82 {dimension_numbers = #tpu.dot_dimension_numbers<[2], [1], [1], [2], [0, 0, 0, 1, 1, 2], [0], [0]>} : vector<2x8x8xf32>, vector<2x8x8xf32>, vector<2x8x8xf32> -> vector<2x8x8xf32>
    "tpu.trace_stop"() : () -> ()
    %213 = vector.shape_cast %212 : vector<2x8x8xf32> to vector<16x8xf32>
    %214 = vector.extract_strided_slice %171 {offsets = [8, 0], sizes = [8, 32], strides = [1, 1]} : vector<32x32xf32> to vector<8x32xf32>
    %cst_83 = arith.constant dense<0.000000e+00> : vector<16x32xf32>
    %215 = tpu.matmul %213, %214, %cst_83 {dimension_numbers = #tpu.dot_dimension_numbers<[1], [0], [0], [1], [0, 0, 1, 1], [], []>} : vector<16x8xf32>, vector<8x32xf32>, vector<16x32xf32> -> vector<16x32xf32>
    %216 = arith.addf %193, %215 : vector<16x32xf32>
    %217 = vector.extract_strided_slice %170 {offsets = [0, 16], sizes = [16, 8], strides = [1, 1]} : vector<16x96xf32> to vector<16x8xf32>
    %218 = vector.shape_cast %217 : vector<16x8xf32> to vector<2x8x8xf32>
    %219 = vector.extract_strided_slice %170 {offsets = [0, 48], sizes = [16, 8], strides = [1, 1]} : vector<16x96xf32> to vector<16x8xf32>
    %220 = vector.shape_cast %219 : vector<16x8xf32> to vector<2x8x8xf32>
    %221 = vector.extract_strided_slice %170 {offsets = [0, 80], sizes = [16, 8], strides = [1, 1]} : vector<16x96xf32> to vector<16x8xf32>
    %222 = vector.shape_cast %221 : vector<16x8xf32> to vector<2x8x8xf32>
    "tpu.trace_start"() <{level = 10 : i32, message = "bsd,btd->bst"}> : () -> ()
    %cst_84 = arith.constant dense<0.000000e+00> : vector<2x8x8xf32>
    %223 = tpu.matmul %218, %220, %cst_84 {dimension_numbers = #tpu.dot_dimension_numbers<[2], [2], [1], [1], [0, 0, 0, 1, 1, 1], [0], [0]>} : vector<2x8x8xf32>, vector<2x8x8xf32>, vector<2x8x8xf32> -> vector<2x8x8xf32>
    "tpu.trace_stop"() : () -> ()
    %cst_85 = arith.constant 0.353553385 : f32
    %224 = vector.broadcast %cst_85 : f32 to vector<2x8x8xf32>
    %225 = arith.mulf %223, %224 : vector<2x8x8xf32>
    %cst_86 = arith.constant dense<0xFF800000> : vector<2x8xf32>
    %226 = vector.multi_reduction <maximumf>, %225, %cst_86 [2] : vector<2x8x8xf32> to vector<2x8xf32>
    %227 = vector.shape_cast %226 : vector<2x8xf32> to vector<2x8x1xf32>
    %228 = vector.broadcast %227 : vector<2x8x1xf32> to vector<2x8x8xf32>
    %229 = arith.subf %225, %228 : vector<2x8x8xf32>
    %230 = math.exp %229 : vector<2x8x8xf32>
    %cst_87 = arith.constant dense<0.000000e+00> : vector<2x8xf32>
    %231 = vector.multi_reduction <add>, %230, %cst_87 [2] : vector<2x8x8xf32> to vector<2x8xf32>
    %232 = vector.shape_cast %231 : vector<2x8xf32> to vector<2x8x1xf32>
    %233 = vector.broadcast %232 : vector<2x8x1xf32> to vector<2x8x8xf32>
    %234 = arith.divf %230, %233 : vector<2x8x8xf32>
    "tpu.trace_start"() <{level = 10 : i32, message = "bst,btd->bsd"}> : () -> ()
    %cst_88 = arith.constant dense<0.000000e+00> : vector<2x8x8xf32>
    %235 = tpu.matmul %234, %222, %cst_88 {dimension_numbers = #tpu.dot_dimension_numbers<[2], [1], [1], [2], [0, 0, 0, 1, 1, 2], [0], [0]>} : vector<2x8x8xf32>, vector<2x8x8xf32>, vector<2x8x8xf32> -> vector<2x8x8xf32>
    "tpu.trace_stop"() : () -> ()
    %236 = vector.shape_cast %235 : vector<2x8x8xf32> to vector<16x8xf32>
    %237 = vector.extract_strided_slice %171 {offsets = [16, 0], sizes = [8, 32], strides = [1, 1]} : vector<32x32xf32> to vector<8x32xf32>
    %cst_89 = arith.constant dense<0.000000e+00> : vector<16x32xf32>
    %238 = tpu.matmul %236, %237, %cst_89 {dimension_numbers = #tpu.dot_dimension_numbers<[1], [0], [0], [1], [0, 0, 1, 1], [], []>} : vector<16x8xf32>, vector<8x32xf32>, vector<16x32xf32> -> vector<16x32xf32>
    %239 = arith.addf %216, %238 : vector<16x32xf32>
    %240 = vector.extract_strided_slice %170 {offsets = [0, 24], sizes = [16, 8], strides = [1, 1]} : vector<16x96xf32> to vector<16x8xf32>
    %241 = vector.shape_cast %240 : vector<16x8xf32> to vector<2x8x8xf32>
    %242 = vector.extract_strided_slice %170 {offsets = [0, 56], sizes = [16, 8], strides = [1, 1]} : vector<16x96xf32> to vector<16x8xf32>
    %243 = vector.shape_cast %242 : vector<16x8xf32> to vector<2x8x8xf32>
    %244 = vector.extract_strided_slice %170 {offsets = [0, 88], sizes = [16, 8], strides = [1, 1]} : vector<16x96xf32> to vector<16x8xf32>
    %245 = vector.shape_cast %244 : vector<16x8xf32> to vector<2x8x8xf32>
    "tpu.trace_start"() <{level = 10 : i32, message = "bsd,btd->bst"}> : () -> ()
    %cst_90 = arith.constant dense<0.000000e+00> : vector<2x8x8xf32>
    %246 = tpu.matmul %241, %243, %cst_90 {dimension_numbers = #tpu.dot_dimension_numbers<[2], [2], [1], [1], [0, 0, 0, 1, 1, 1], [0], [0]>} : vector<2x8x8xf32>, vector<2x8x8xf32>, vector<2x8x8xf32> -> vector<2x8x8xf32>
    "tpu.trace_stop"() : () -> ()
    %cst_91 = arith.constant 0.353553385 : f32
    %247 = vector.broadcast %cst_91 : f32 to vector<2x8x8xf32>
    %248 = arith.mulf %246, %247 : vector<2x8x8xf32>
    %cst_92 = arith.constant dense<0xFF800000> : vector<2x8xf32>
    %249 = vector.multi_reduction <maximumf>, %248, %cst_92 [2] : vector<2x8x8xf32> to vector<2x8xf32>
    %250 = vector.shape_cast %249 : vector<2x8xf32> to vector<2x8x1xf32>
    %251 = vector.broadcast %250 : vector<2x8x1xf32> to vector<2x8x8xf32>
    %252 = arith.subf %248, %251 : vector<2x8x8xf32>
    %253 = math.exp %252 : vector<2x8x8xf32>
    %cst_93 = arith.constant dense<0.000000e+00> : vector<2x8xf32>
    %254 = vector.multi_reduction <add>, %253, %cst_93 [2] : vector<2x8x8xf32> to vector<2x8xf32>
    %255 = vector.shape_cast %254 : vector<2x8xf32> to vector<2x8x1xf32>
    %256 = vector.broadcast %255 : vector<2x8x1xf32> to vector<2x8x8xf32>
    %257 = arith.divf %253, %256 : vector<2x8x8xf32>
    "tpu.trace_start"() <{level = 10 : i32, message = "bst,btd->bsd"}> : () -> ()
    %cst_94 = arith.constant dense<0.000000e+00> : vector<2x8x8xf32>
    %258 = tpu.matmul %257, %245, %cst_94 {dimension_numbers = #tpu.dot_dimension_numbers<[2], [1], [1], [2], [0, 0, 0, 1, 1, 2], [0], [0]>} : vector<2x8x8xf32>, vector<2x8x8xf32>, vector<2x8x8xf32> -> vector<2x8x8xf32>
    "tpu.trace_stop"() : () -> ()
    %259 = vector.shape_cast %258 : vector<2x8x8xf32> to vector<16x8xf32>
    %260 = vector.extract_strided_slice %171 {offsets = [24, 0], sizes = [8, 32], strides = [1, 1]} : vector<32x32xf32> to vector<8x32xf32>
    %cst_95 = arith.constant dense<0.000000e+00> : vector<16x32xf32>
    %261 = tpu.matmul %259, %260, %cst_95 {dimension_numbers = #tpu.dot_dimension_numbers<[1], [0], [0], [1], [0, 0, 1, 1], [], []>} : vector<16x8xf32>, vector<8x32xf32>, vector<16x32xf32> -> vector<16x32xf32>
    %262 = arith.addf %239, %261 : vector<16x32xf32>
    %c0_96 = arith.constant 0 : index
    %c0_97 = arith.constant 0 : index
    %263 = vector.load %arg18[%c0_96, %c0_97] : memref<1x32xf32, #tpu.memory_space<vmem>>, vector<1x32xf32>
    %264 = vector.broadcast %263 : vector<1x32xf32> to vector<16x32xf32>
    %265 = arith.addf %262, %264 : vector<16x32xf32>
    %266 = arith.addf %165, %265 : vector<16x32xf32>
    %c0_98 = arith.constant 0 : index
    %c0_99 = arith.constant 0 : index
    %267 = vector.load %arg19[%c0_98, %c0_99] : memref<1x32xf32, #tpu.memory_space<vmem>>, vector<1x32xf32>
    %c0_100 = arith.constant 0 : index
    %c0_101 = arith.constant 0 : index
    %268 = vector.load %arg20[%c0_100, %c0_101] : memref<1x32xf32, #tpu.memory_space<vmem>>, vector<1x32xf32>
    %cst_102 = arith.constant dense<0.000000e+00> : vector<16xf32>
    %269 = vector.multi_reduction <add>, %266, %cst_102 [1] : vector<16x32xf32> to vector<16xf32>
    %270 = vector.shape_cast %269 : vector<16xf32> to vector<16x1xf32>
    %cst_103 = arith.constant 3.200000e+01 : f32
    %271 = vector.broadcast %cst_103 : f32 to vector<16x1xf32>
    %272 = arith.divf %270, %271 : vector<16x1xf32>
    %273 = vector.broadcast %272 : vector<16x1xf32> to vector<16x32xf32>
    %274 = arith.subf %266, %273 : vector<16x32xf32>
    %275 = arith.mulf %274, %274 : vector<16x32xf32>
    %cst_104 = arith.constant dense<0.000000e+00> : vector<16xf32>
    %276 = vector.multi_reduction <add>, %275, %cst_104 [1] : vector<16x32xf32> to vector<16xf32>
    %277 = vector.shape_cast %276 : vector<16xf32> to vector<16x1xf32>
    %cst_105 = arith.constant 3.200000e+01 : f32
    %278 = vector.broadcast %cst_105 : f32 to vector<16x1xf32>
    %279 = arith.divf %277, %278 : vector<16x1xf32>
    %cst_106 = arith.constant 9.99999974E-6 : f32
    %280 = vector.broadcast %cst_106 : f32 to vector<16x1xf32>
    %281 = arith.addf %279, %280 : vector<16x1xf32>
    %282 = math.rsqrt %281 : vector<16x1xf32>
    %283 = vector.broadcast %282 : vector<16x1xf32> to vector<16x32xf32>
    %284 = arith.mulf %274, %283 : vector<16x32xf32>
    %285 = vector.broadcast %267 : vector<1x32xf32> to vector<16x32xf32>
    %286 = arith.mulf %284, %285 : vector<16x32xf32>
    %287 = vector.broadcast %268 : vector<1x32xf32> to vector<16x32xf32>
    %288 = arith.addf %286, %287 : vector<16x32xf32>
    %c0_107 = arith.constant 0 : index
    %c0_108 = arith.constant 0 : index
    %289 = vector.load %arg21[%c0_107, %c0_108] : memref<32x64xf32, #tpu.memory_space<vmem>>, vector<32x64xf32>
    %cst_109 = arith.constant dense<0.000000e+00> : vector<16x64xf32>
    %290 = tpu.matmul %288, %289, %cst_109 {dimension_numbers = #tpu.dot_dimension_numbers<[1], [0], [0], [1], [0, 0, 1, 1], [], []>} : vector<16x32xf32>, vector<32x64xf32>, vector<16x64xf32> -> vector<16x64xf32>
    %c0_110 = arith.constant 0 : index
    %c0_111 = arith.constant 0 : index
    %291 = vector.load %arg22[%c0_110, %c0_111] : memref<1x64xf32, #tpu.memory_space<vmem>>, vector<1x64xf32>
    %292 = vector.broadcast %291 : vector<1x64xf32> to vector<16x64xf32>
    %293 = arith.addf %290, %292 : vector<16x64xf32>
    %cst_112 = arith.constant 0.000000e+00 : f32
    %294 = vector.broadcast %cst_112 : f32 to vector<16x64xf32>
    %295 = arith.maximumf %293, %294 : vector<16x64xf32>
    %c0_113 = arith.constant 0 : index
    %c0_114 = arith.constant 0 : index
    %296 = vector.load %arg23[%c0_113, %c0_114] : memref<64x32xf32, #tpu.memory_space<vmem>>, vector<64x32xf32>
    %cst_115 = arith.constant dense<0.000000e+00> : vector<16x32xf32>
    %297 = tpu.matmul %295, %296, %cst_115 {dimension_numbers = #tpu.dot_dimension_numbers<[1], [0], [0], [1], [0, 0, 1, 1], [], []>} : vector<16x64xf32>, vector<64x32xf32>, vector<16x32xf32> -> vector<16x32xf32>
    %c0_116 = arith.constant 0 : index
    %c0_117 = arith.constant 0 : index
    %298 = vector.load %arg24[%c0_116, %c0_117] : memref<1x32xf32, #tpu.memory_space<vmem>>, vector<1x32xf32>
    %299 = vector.broadcast %298 : vector<1x32xf32> to vector<16x32xf32>
    %300 = arith.addf %297, %299 : vector<16x32xf32>
    %301 = arith.addf %288, %300 : vector<16x32xf32>
    %c0_118 = arith.constant 0 : index
    %c0_119 = arith.constant 0 : index
    %302 = vector.load %arg25[%c0_118, %c0_119] : memref<1x32xf32, #tpu.memory_space<vmem>>, vector<1x32xf32>
    %c0_120 = arith.constant 0 : index
    %c0_121 = arith.constant 0 : index
    %303 = vector.load %arg26[%c0_120, %c0_121] : memref<1x32xf32, #tpu.memory_space<vmem>>, vector<1x32xf32>
    %cst_122 = arith.constant dense<0.000000e+00> : vector<16xf32>
    %304 = vector.multi_reduction <add>, %301, %cst_122 [1] : vector<16x32xf32> to vector<16xf32>
    %305 = vector.shape_cast %304 : vector<16xf32> to vector<16x1xf32>
    %cst_123 = arith.constant 3.200000e+01 : f32
    %306 = vector.broadcast %cst_123 : f32 to vector<16x1xf32>
    %307 = arith.divf %305, %306 : vector<16x1xf32>
    %308 = vector.broadcast %307 : vector<16x1xf32> to vector<16x32xf32>
    %309 = arith.subf %301, %308 : vector<16x32xf32>
    %310 = arith.mulf %309, %309 : vector<16x32xf32>
    %cst_124 = arith.constant dense<0.000000e+00> : vector<16xf32>
    %311 = vector.multi_reduction <add>, %310, %cst_124 [1] : vector<16x32xf32> to vector<16xf32>
    %312 = vector.shape_cast %311 : vector<16xf32> to vector<16x1xf32>
    %cst_125 = arith.constant 3.200000e+01 : f32
    %313 = vector.broadcast %cst_125 : f32 to vector<16x1xf32>
    %314 = arith.divf %312, %313 : vector<16x1xf32>
    %cst_126 = arith.constant 9.99999974E-6 : f32
    %315 = vector.broadcast %cst_126 : f32 to vector<16x1xf32>
    %316 = arith.addf %314, %315 : vector<16x1xf32>
    %317 = math.rsqrt %316 : vector<16x1xf32>
    %318 = vector.broadcast %317 : vector<16x1xf32> to vector<16x32xf32>
    %319 = arith.mulf %309, %318 : vector<16x32xf32>
    %320 = vector.broadcast %302 : vector<1x32xf32> to vector<16x32xf32>
    %321 = arith.mulf %319, %320 : vector<16x32xf32>
    %322 = vector.broadcast %303 : vector<1x32xf32> to vector<16x32xf32>
    %323 = arith.addf %321, %322 : vector<16x32xf32>
    %c0_127 = arith.constant 0 : index
    %c0_128 = arith.constant 0 : index
    %324 = vector.load %arg2[%c0_127, %c0_128] : memref<2x16xf32, #tpu.memory_space<vmem>>, vector<2x16xf32>
    %cst_129 = arith.constant dense<0.000000e+00> : vector<2x32xf32>
    %325 = tpu.matmul %324, %323, %cst_129 {dimension_numbers = #tpu.dot_dimension_numbers<[1], [0], [0], [1], [0, 0, 1, 1], [], []>} : vector<2x16xf32>, vector<16x32xf32>, vector<2x32xf32> -> vector<2x32xf32>
    %c0_130 = arith.constant 0 : index
    %c0_131 = arith.constant 0 : index
    %326 = vector.load %arg27[%c0_130, %c0_131] : memref<32x128xf32, #tpu.memory_space<vmem>>, vector<32x128xf32>
    %cst_132 = arith.constant dense<0.000000e+00> : vector<2x128xf32>
    %327 = tpu.matmul %325, %326, %cst_132 {dimension_numbers = #tpu.dot_dimension_numbers<[1], [0], [0], [1], [0, 0, 1, 1], [], []>} : vector<2x32xf32>, vector<32x128xf32>, vector<2x128xf32> -> vector<2x128xf32>
    %c0_133 = arith.constant 0 : index
    %c0_134 = arith.constant 0 : index
    %328 = vector.load %arg28[%c0_133, %c0_134] : memref<1x128xf32, #tpu.memory_space<vmem>>, vector<1x128xf32>
    %329 = vector.broadcast %328 : vector<1x128xf32> to vector<2x128xf32>
    %330 = arith.addf %327, %329 : vector<2x128xf32>
    %c0_135 = arith.constant 0 : index
    %c0_136 = arith.constant 0 : index
    %331 = vector.load %arg29[%c0_135, %c0_136] : memref<2x128xf32, #tpu.memory_space<vmem>>, vector<2x128xf32>
    tpu.vector_store %arg29[%c0_135, %c0_136], %330 {strides = array<i32>} : memref<2x128xf32, #tpu.memory_space<vmem>>, vector<2x128xf32>,
    return
  }
}

</mosaic_0001>

<bundles_post_ra>
// kernel: transformer_model_forward.1
= control target key start
LH: loop header
LB: loop body
LE: loop exit
PB: predicated region body
PF: predicated region fallthrough
CT: control target
= control target key end

     0   :  { %s2528_s6 = smov 1   ;;  %s2529_s10 = smov 2   ;;  %s3084_s0 = inlined_call_operand.smem [shape: u32[30], index: -1, kind: input, shape index: {}] }
   0x1   :  { %s2580_s5 = sld [smem:[%s3084_s0]]   ;;  %s2530_s14 = smov 3  }
   0x2   :  { %s2585_s9 = sld [smem:[%s3084_s0 + %s2528_s6]]   ;;  %s2531_s18 = smov 4  }
   0x3   :  { %s2590_s13 = sld [smem:[%s3084_s0 + %s2529_s10]]   ;;  %s2532_s22 = smov 5  }
   0x4   :  { %s2595_s17 = sld [smem:[%s3084_s0 + %s2530_s14]]   ;;  %s2533_s26 = smov 6  }
   0x5   :  { %s2600_s21 = sld [smem:[%s3084_s0 + %s2531_s18]]   ;;  %s2534_s30 = smov 7  }
   0x6   :  { %s2605_s25 = sld [smem:[%s3084_s0 + %s2532_s22]]   ;;  %s2535_s4 = smov 8  }
   0x7   :  { %s2610_s29 = sld [smem:[%s3084_s0 + %s2533_s26]]   ;;  %s2536_s10 = smov 9  }
   0x8   :  { %s2615_s3 = sld [smem:[%s3084_s0 + %s2534_s30]]   ;;  %s2537_s15 = smov 10  }
   0x9   :  { %3088 = sst [smem:[#allocation5_spill]] %s2590_s13  ;;  %s2538_s20 = smov 11  }
   0xa   :  { %s2620_s8 = sld [smem:[%s3084_s0 + %s2535_s4]]   ;;  %s2539_s26 = smov 12  }
   0xb   :  { %s2625_s14 = sld [smem:[%s3084_s0 + %s2536_s10]]   ;;  %s2540_s1 = smov 13  }
   0xc   :  { %s2630_s19 = sld [smem:[%s3084_s0 + %s2537_s15]]   ;;  %s2541_s7 = smov 14  }
   0xd   :  { %s2635_s24 = sld [smem:[%s3084_s0 + %s2538_s20]]   ;;  %s2542_s15 = smov 15  }
   0xe   :  { %s2640_s30 = sld [smem:[%s3084_s0 + %s2539_s26]]   ;;  %s2543_s22 = smov 16  }
   0xf   :  { %s2645_s6 = sld [smem:[%s3084_s0 + %s2540_s1]]   ;;  %s2544_s28 = smov 17  }
  0x10   :  { %s2650_s12 = sld [smem:[%s3084_s0 + %s2541_s7]]   ;;  %s2545_s7 = smov 18  }
  0x11   :  { %s2655_s20 = sld [smem:[%s3084_s0 + %s2542_s15]]   ;;  %s2546_s15 = smov 19  }
  0x12   :  { %s2660_s27 = sld [smem:[%s3084_s0 + %s2543_s22]]   ;;  %s2547_s22 = smov 20  }
  0x13   :  { %s2665_s4 = sld [smem:[%s3084_s0 + %s2544_s28]]   ;;  %s2548_s28 = smov 21  }
  0x14   :  { %s2670_s13 = sld [smem:[%s3084_s0 + %s2545_s7]]   ;;  %s2549_s7 = smov 22  }
  0x16   :  { %3089 = sst [smem:[#allocation6_spill]] %s2650_s12 }
  0x17   :  { %s2675_s12 = sld [smem:[%s3084_s0 + %s2546_s15]]   ;;  %s2550_s15 = smov 23  }
  0x18   :  { %3090 = sst [smem:[#allocation7_spill]] %s2660_s27 }
  0x19   :  { %3091 = sst [smem:[#allocation8_spill]] %s2665_s4 }
  0x1a   :  { %3092 = sst [smem:[#allocation9_spill]] %s2670_s13 }
  0x1b   :  { %s2680_s27 = sld [smem:[%s3084_s0 + %s2547_s22]]   ;;  %s2551_s22 = smov 24  }
  0x1c   :  { %s2685_s4 = sld [smem:[%s3084_s0 + %s2548_s28]]   ;;  %s2552_s28 = smov 25  }
  0x1d   :  { %3093 = sst [smem:[#allocation10_spill]] %s2675_s12 }
  0x1e   :  { %s2690_s13 = sld [smem:[%s3084_s0 + %s2549_s7]]   ;;  %s2553_s7 = smov 26  }
  0x1f   :  { %s2695_s12 = sld [smem:[%s3084_s0 + %s2550_s15]]   ;;  %s2554_s15 = smov 27  }
  0x21   :  { %3094 = sst [smem:[#allocation11_spill]] %s2680_s27 }
  0x22   :  { %3095 = sst [smem:[#allocation12_spill]] %s2685_s4 }
  0x23   :  { %s2700_s27 = sld [smem:[%s3084_s0 + %s2551_s22]]   ;;  %s2555_s22 = smov 28  }
  0x24   :  { %3096 = sst [smem:[#allocation13_spill]] %s2690_s13 }
  0x25   :  { %3097 = sst [smem:[#allocation14_spill]] %s2695_s12 }
  0x26   :  { %s2705_s4 = sld [smem:[%s3084_s0 + %s2552_s28]]   ;;  %s2556_s28 = smov 29  }
  0x27   :  { %s2710_s13 = sld [smem:[%s3084_s0 + %s2553_s7]]  }
  0x28   :  { %s2715_s12 = sld [smem:[%s3084_s0 + %s2554_s15]]  }
  0x29   :  { %3098 = sst [smem:[#allocation15_spill]] %s2700_s27 }
  0x2a   :  { %s2720_s27 = sld [smem:[%s3084_s0 + %s2555_s22]]  }
  0x2c   :  { %3099 = sst [smem:[#allocation16_spill]] %s2705_s4 }
  0x2d   :  { %s2725_s4 = sld [smem:[%s3084_s0 + %s2556_s28]]  }
  0x2e   :  { %v123_v0 = vld [vmem:[%s2580_s5] sm:$0xff]  ;;  %v154_v1 = vld [vmem:[%s2585_s9 + $0x78] sm:$0xff]  ;;  %v2557_v2 = vmov 0   ;;  %v153_v3 = vld [vmem:[%s2585_s9 + $0x70] sm:$0xff] }
  0x2f   :  { %2402 = vset.pattern.permute.xlu0 %v2557_v2  ;;  %155 = vmatpush.msra.mxu0 %v154_v1  ;;  %v152_v4 = vld [vmem:[%s2585_s9 + $0x68] sm:$0xff]  ;;  %v151_v5 = vld [vmem:[%s2585_s9 + $0x60] sm:$0xff]  ;;  %v150_v7 = vld [vmem:[%s2585_s9 + $0x58] sm:$0xff] }
  0x30   :  { %128 = vperm.xlu0 %2402, %v123_v0   ;;  %v124_v6 = vld [vmem:[%s2580_s5 + $0x8] sm:$0xff]  ;;  %v149_v8 = vld [vmem:[%s2585_s9 + $0x50] sm:$0xff] }
  0x31   :  { %156 = vmatpush.msra.mxu0 %v153_v3  ;;  %v148_v9 = vld [vmem:[%s2585_s9 + $0x48] sm:$0xff] }
  0x33   :  { %157 = vmatpush.msra.mxu0 %v152_v4 }
  0x35   :  { %158 = vmatpush.msra.mxu0 %v151_v5 }
  0x37   :  { %159 = vmatpush.msra.mxu0 %v150_v7 }
  0x38   :  { %131 = vperm.xlu0 %2402, %v124_v6  }
  0x39   :  { %160 = vmatpush.msra.mxu0 %v149_v8 }
  0x3a   :  { %64 = vsyncpa [#allocation3], 0  ;;  %v147_v10 = vld [vmem:[%s2585_s9 + $0x40] sm:$0xff]  ;;  %v146_v11 = vld [vmem:[%s2585_s9 + $0x38] sm:$0xff]  ;;  %v125_v22 = vlaneseq  ;;  %v2558_v25 = vmov 1.0   ;;  %vm186_vm2 = vcmask 261120  }
  0x3b   :  { %161 = vmatpush.msra.mxu0 %v148_v9  ;;  %v145_v12 = vld [vmem:[%s2585_s9 + $0x30] sm:$0xff]  ;;  %v144_v13 = vld [vmem:[%s2585_s9 + $0x28] sm:$0xff]  ;;  %v143_v14 = vld [vmem:[%s2585_s9 + $0x20] sm:$0xff]  ;;  %s2559_s0 = smov 64   ;;  %s2560_s5 = smov 96   ;;  %vm223_vm3 = vcmask 64512  }
  0x3c   :  { %v142_v15 = vld [vmem:[%s2585_s9 + $0x18] sm:$0xff]  ;;  %v141_v16 = vld [vmem:[%s2585_s9 + $0x10] sm:$0xff]  ;;  %v140_v17 = vld [vmem:[%s2585_s9 + $0x8] sm:$0xff]  ;;  %v126_v23 = vand.u32 127, %v125_v22  ;;  %s2564_s7 = smov 112   ;;  %s2565_s10 = smov 80  }
  0x3d   :  { %162 = vmatpush.msra.mxu0 %v147_v10  ;;  %v139_v18 = vld [vmem:[%s2585_s9] sm:$0xff]  ;;  %v181_v19 = vld [vmem:[%s2595_s17 + $0x18] sm:$0xff]  ;;  %v180_v20 = vld [vmem:[%s2595_s17 + $0x10] sm:$0xff]  ;;  %s2561_s9 = smov 88   ;;  %s2566_s11 = smov 72  }
  0x3e   :  { %205 = vmatpush.msra.mxu1 %v181_v19  ;;  %v179_v21 = vld [vmem:[%s2595_s17 + $0x8] sm:$0xff]  ;;  %v178_v27 = vld [vmem:[%s2595_s17] sm:$0xff]  ;;  %s2562_s17 = smov 120   ;;  %s2567_s15 = smov 104  }
  0x3f   :  { %163 = vmatpush.msra.mxu0 %v146_v11  ;;  %v2403_v31 = vld [vmem:[%s2600_s21] ss:$0 sm:$0xff]  ;;  %s2563_s21 = smov 56   ;;  %s2568_s16 = smov 48  }
  0x40   :  { %206 = vmatpush.msra.mxu1 %v180_v20  ;;  %s2569_s18 = smov 40   ;;  %s3110_s22 = sld [smem:[#allocation16_spill]] }
  0x41   :  { %164 = vmatpush.msra.mxu0 %v145_v12  ;;  %s3111_s23 = sld [smem:[#allocation5_spill]]  ;;  %s2238_s28 = sshll.u32 %s2725_s4, 4  ;;  %s2239_s28 = int_to_ptr.hbm [resolvable:$true] %s2238_s28 }
  0x42   :  { %207 = vmatpush.msra.mxu1 %v179_v21  ;;  %s2514_s1 = sshra.s32 %s2239_s28, 4  ;;  %s2515_s1 = int_to_ptr.hbm [resolvable:$true] %s2514_s1 }
  0x43   :  { %165 = vmatpush.msra.mxu0 %v144_v13  ;;  %s2516_s2 = scalar_lea.hbm %s2515_s1, 2  ;;  %p2519_p1 = scmp.lt.s32.totalorder %s2515_s1, %s2725_s4 }
  0x44   :  { %208 = vmatpush.msra.mxu1 %v178_v27  ;;  %p2517_p0 = scmp.ne.s32.totalorder %s2515_s1, %s2516_s2 }
  0x45   :  { %166 = vmatpush.msra.mxu0 %v143_v14 }
  0x47   :  { %167 = vmatpush.msra.mxu0 %v142_v15 }
  0x49   :  { %168 = vmatpush.msra.mxu0 %v141_v16 }
  0x4b   :  { %169 = vmatpush.msra.mxu0 %v140_v17 }
  0x4d   :  { %170 = vmatpush.msra.mxu0 %v139_v18 }
  0xa2   :  { %v129_v24 = vpop.permute.xlu0 %128 }
  0xa3   :  { %vm133_vm0 = vcmp.eq.s32.totalorder %v126_v23, %v129_v24 }
  0xa4   :  { %2278 = vmatmul.msk.f32.vlgmr.msra.gmra.mxu0 %vm133_vm0, %v2558_v25 }
  0xaa   :  { %v132_v26 = vpop.permute.xlu0 %131 }
  0xab   :  { %vm134_vm1 = vcmp.eq.s32.totalorder %v126_v23, %v132_v26 }
  0xac   :  { %2279 = vmatmul.msk.f32.gmra.mxu0 %vm134_vm1, %v2558_v25 }
 0x121   :  { %v2749_v28 = vpop.f32.mrf.mxu0 }
 0x122   :  { %2280 = vmatmul.msk.f32.vlgmr.msra.gmra.mxu1 %vm186_vm2, %v2749_v28 }
 0x129   :  { %v2753_v29 = vpop.f32.mrf.mxu0 }
 0x12a   :  { %2281 = vmatmul.msk.f32.gmra.mxu1 %vm186_vm2, %v2753_v29 }
 0x19f   :  { %v210_v30 = vpop.f32.mrf.mxu1 }
 0x1a0   :  { %v2764_v34 = vadd.f32 %v2403_v31, %v210_v30 }
 0x1a7   :  { %v213_v32 = vpop.f32.mrf.mxu1 }
 0x1a8   :  { %v2758_v33 = vadd.f32 %v2403_v31, %v213_v32 }
 0x1aa   :  { %351 = vrot.lane.b32.xlu0 %v2758_v33, %s2559_s0  ;;  %249 = vrot.lane.b32.xlu1 %v2758_v33, %s2560_s5 }
 0x1b2   :  { %221 = vrot.lane.b32.xlu1 %v2764_v34, %s2560_s5 }
 0x1ba   :  { %407 = vrot.lane.b32.xlu1 %v2758_v33, %s2561_s9 }
 0x21c   :  { %v352_v35 = vpop.permute.xlu0 %351  ;;  %v250_v36 = vpop.permute.xlu1 %249 }
 0x21d   :  { %2284 = vmatpush.xpose.msk.msra.mxu3 %vm223_vm3, %v250_v36 }
 0x220   :  { %2285 = vmatmul.msk.f32.vlgmr.msra.gmra.mxu3 %vm223_vm3, %v2758_v33 }
 0x221   :  { %372 = vmatpush.msrb.mxu3 %v352_v35 }
 0x224   :  { %v222_v37 = vpop.permute.xlu1 %221 }
 0x225   :  { %2282 = vmatpush.xpose.msk.msra.mxu2 %vm223_vm3, %v222_v37 }
 0x228   :  { %2283 = vmatmul.msk.f32.vlgmr.msra.gmra.mxu2 %vm223_vm3, %v2764_v34 }
 0x22c   :  { %v408_v38 = vpop.permute.xlu1 %407 }
 0x22d   :  { %2290 = vmatpush.xpose.msk.msra.mxu3 %vm223_vm3, %v408_v38 }
 0x2a3   :  { %v272_v39 = vpop.f32.mrf.mxu3 }
 0x2a4   :  { %v276_v40 = vmul.f32 0.35355338, %v272_v39 }
 0x2a6   :  { %v280_v41 = vsel %vm223_vm3, %v276_v40, -inf }
 0x2a7   :  { %281 = vmax.xlane.f32.xlu2 %v280_v41 }
 0x2ab   :  { %v245_v42 = vpop.f32.mrf.mxu2 }
 0x2ac   :  { %v275_v43 = vmul.f32 0.35355338, %v245_v42 }
 0x2ae   :  { %v277_v44 = vsel %vm223_vm3, %v275_v43, -inf }
 0x2af   :  { %278 = vmax.xlane.f32.xlu0 %v277_v44 }
 0x31a   :  { %v282_v45 = vpop.xlane.xlu2 %281 }
 0x31b   :  { %v284_v46 = vsub.f32 %v276_v40, %v282_v45 }
 0x31d   :  { %v287_v47 = vmul.f32 1.442695, %v284_v46 }
 0x31f   :  { %2420 = vpow2.f32 %v287_v47 }
 0x322   :  { %v279_v48 = vpop.xlane.xlu0 %278 }
 0x323   :  { %v283_v49 = vsub.f32 %v275_v43, %v279_v48 }
 0x325   :  { %v2421_v50 = vpop.eup %2420  ;;  %v285_v51 = vmul.f32 1.442695, %v283_v49 }
 0x326   :  { %v292_v52 = vsel %vm223_vm3, %v2421_v50, 0.0 }
 0x327   :  { %2422 = vpow2.f32 %v285_v51  ;;  %293 = vadd.xlane.f32.xlu2 %v292_v52 }
 0x32d   :  { %v2423_v53 = vpop.eup %2422 }
 0x32e   :  { %v289_v54 = vsel %vm223_vm3, %v2423_v53, 0.0 }
 0x32f   :  { %290 = vadd.xlane.f32.xlu1 %v289_v54 }
 0x33f   :  { %405 = vrot.lane.b32.xlu2 %v2758_v33, %s2562_s17 }
 0x347   :  { %325 = vrot.lane.b32.xlu2 %v2764_v34, %s2559_s0 }
 0x348   :  { %509 = vrot.lane.b32.xlu1 %v2758_v33, %s2563_s21 }
 0x34f   :  { %379 = vrot.lane.b32.xlu2 %v2764_v34, %s2561_s9 }
 0x350   :  { %593 = vrot.lane.b32.xlu1 %v2764_v34, %s2564_s7 }
 0x357   :  { %377 = vrot.lane.b32.xlu2 %v2764_v34, %s2562_s17 }
 0x39a   :  { %v294_v55 = vpop.xlane.xlu2 %293 }
 0x39b   :  { %2424 = vrcp.f32 %v294_v55  ;;  %v321_v61 = vand.u32 2147483648, %v294_v55  ;;  %v319_v63 = vand.u32 2147483647, %v294_v55  ;;  %vm315_vm5 = vweird.f32 %v294_v55 }
 0x39d   :  { %v322_v2 = vor.u32 1.1754944e-38, %v321_v61  ;;  %vm320_vm7 = vcmp.eq.f32.partialorder %v319_v63, 8.507059e+37 }
 0x3a1   :  { %v2425_v56 = vpop.eup %2424 }
 0x3a2   :  { %v311_v57 = vmul.f32 %v2425_v56, %v294_v55  ;;  %v406_v58 = vpop.permute.xlu2 %405  ;;  %v291_v59 = vpop.xlane.xlu1 %290  ;;  %vm316_vm4 = vweird.f32 %v2425_v56 }
 0x3a3   :  { %2426 = vrcp.f32 %v291_v59  ;;  %vm317_vm6 = vmor %vm315_vm5, %vm316_vm4  ;;  %v306_v9 = vand.u32 2147483648, %v291_v59  ;;  %v304_v11 = vand.u32 2147483647, %v291_v59  ;;  %vm300_vm9 = vweird.f32 %v291_v59 }
 0x3a4   :  { %v312_v60 = vsub.f32 1.0, %v311_v57 }
 0x3a5   :  { %v307_v13 = vor.u32 1.1754944e-38, %v306_v9  ;;  %vm305_vm11 = vcmp.eq.f32.partialorder %v304_v11, 8.507059e+37 }
 0x3a6   :  { %v313_v62 = vmul.f32 %v2425_v56, %v312_v60 }
 0x3a8   :  { %v314_v0 = vadd.f32 %v2425_v56, %v313_v62 }
 0x3a9   :  { %v2427_v1 = vpop.eup %2426 }
 0x3aa   :  { %v296_v3 = vmul.f32 %v2427_v1, %v291_v59  ;;  %v326_v4 = vpop.permute.xlu2 %325  ;;  %v318_v5 = vsel %vm317_vm6, %v2425_v56, %v314_v0  ;;  %vm301_vm8 = vweird.f32 %v2427_v1  ;;  %v216_v0 = vld [vmem:[%s2605_s25] sm:$0xff] }
 0x3ab   :  { %346 = vmatpush.msrb.mxu2 %v326_v4  ;;  %v323_v6 = vsel %vm320_vm7, %v322_v2, %v318_v5  ;;  %vm302_vm10 = vmor %vm300_vm9, %vm301_vm8 }
 0x3ac   :  { %v297_v7 = vsub.f32 1.0, %v296_v3  ;;  %v324_v8 = vmul.f32 %v2421_v50, %v323_v6 }
 0x3ae   :  { %v298_v10 = vmul.f32 %v2427_v1, %v297_v7  ;;  %2287 = vmatmul.msk.f32.vlgmr.msrb.gmra.mxu3 %vm223_vm3, %v324_v8 }
 0x3b0   :  { %v299_v12 = vadd.f32 %v2427_v1, %v298_v10 }
 0x3b2   :  { %v380_v14 = vpop.permute.xlu2 %379  ;;  %v303_v15 = vsel %vm302_vm10, %v2427_v1, %v299_v12  ;;  %v217_v1 = vld [vmem:[%s2605_s25 + $0x8] sm:$0xff] }
 0x3b3   :  { %2288 = vmatpush.xpose.msk.msra.mxu2 %vm223_vm3, %v380_v14  ;;  %v308_v16 = vsel %vm305_vm11, %v307_v13, %v303_v15  ;;  %556 = vmatpush.msrb.mxu3 %v217_v1 }
 0x3b4   :  { %v309_v17 = vmul.f32 %v2423_v53, %v308_v16 }
 0x3b6   :  { %2286 = vmatmul.msk.f32.vlgmr.msrb.gmra.mxu2 %vm223_vm3, %v309_v17  ;;  %2291 = vmatmul.msk.f32.vlgmr.msra.gmra.mxu3 %vm223_vm3, %v406_v58 }
 0x3ba   :  { %v510_v18 = vpop.permute.xlu1 %509  ;;  %v378_v19 = vpop.permute.xlu2 %377 }
 0x3bb   :  { %530 = vmatpush.msrb.mxu2 %v510_v18 }
 0x3be   :  { %2289 = vmatmul.msk.f32.vlgmr.msra.gmra.mxu2 %vm223_vm3, %v378_v19 }
 0x3c2   :  { %v594_v52 = vpop.permute.xlu1 %593 }
 0x431   :  { %v2798_v20 = vpop.f32.mrf.mxu3 }
 0x439   :  { %v430_v21 = vpop.f32.mrf.mxu3  ;;  %v2810_v32 = vpop.f32.mrf.mxu2 }
 0x43a   :  { %v434_v22 = vmul.f32 0.35355338, %v430_v21 }
 0x43c   :  { %v438_v23 = vsel %vm223_vm3, %v434_v22, -inf }
 0x43d   :  { %439 = vmax.xlane.f32.xlu2 %v438_v23 }
 0x441   :  { %v402_v35 = vpop.f32.mrf.mxu2 }
 0x442   :  { %v433_v36 = vmul.f32 0.35355338, %v402_v35 }
 0x444   :  { %v435_v37 = vsel %vm223_vm3, %v433_v36, -inf }
 0x455   :  { %483 = vrot.lane.b32.xlu2 %v2764_v34, %s2563_s21 }
 0x45d   :  { %623 = vrot.lane.b32.xlu2 %v2758_v33, %s2565_s10 }
 0x465   :  { %784 = vrot.lane.b32.xlu2 %v2764_v34, %s2566_s11 }
 0x4b0   :  { %v440_v24 = vpop.xlane.xlu2 %439 }
 0x4b1   :  { %v442_v25 = vsub.f32 %v434_v22, %v440_v24 }
 0x4b3   :  { %v445_v26 = vmul.f32 1.442695, %v442_v25 }
 0x4b5   :  { %2428 = vpow2.f32 %v445_v26 }
 0x4b8   :  { %v484_v27 = vpop.permute.xlu2 %483 }
 0x4b9   :  { %504 = vmatpush.msrb.mxu1 %v484_v27 }
 0x4bb   :  { %v2429_v30 = vpop.eup %2428  ;;  %585 = vmatpush.msra.mxu1 %v216_v0 }
 0x4bc   :  { %v450_v31 = vsel %vm223_vm3, %v2429_v30, 0.0 }
 0x4bd   :  { %451 = vadd.xlane.f32.xlu0 %v450_v31 }
 0x4c0   :  { %v624_v49 = vpop.permute.xlu2 %623 }
 0x4c8   :  { %v785_v53 = vpop.permute.xlu2 %784 }
 0x4d1   :  { %595 = vrot.lane.b32.xlu0 %v2764_v34, %s2565_s10 }
 0x4fb   :  { %436 = vmax.xlane.f32.xlu0 %v435_v37 }
 0x50f   :  { %621 = vrot.lane.b32.xlu0 %v2758_v33, %s2564_s7 }
 0x530   :  { %v452_v38 = vpop.xlane.xlu0 %451 }
 0x531   :  { %2430 = vrcp.f32 %v452_v38  ;;  %v479_v42 = vand.u32 2147483648, %v452_v38  ;;  %v477_v44 = vand.u32 2147483647, %v452_v38  ;;  %vm473_vm13 = vweird.f32 %v452_v38 }
 0x533   :  { %v480_v46 = vor.u32 1.1754944e-38, %v479_v42  ;;  %vm478_vm15 = vcmp.eq.f32.partialorder %v477_v44, 8.507059e+37 }
 0x537   :  { %v2431_v39 = vpop.eup %2430 }
 0x538   :  { %v469_v40 = vmul.f32 %v2431_v39, %v452_v38  ;;  %vm474_vm12 = vweird.f32 %v2431_v39 }
 0x539   :  { %vm475_vm14 = vmor %vm473_vm13, %vm474_vm12 }
 0x53a   :  { %v470_v41 = vsub.f32 1.0, %v469_v40 }
 0x53c   :  { %v471_v43 = vmul.f32 %v2431_v39, %v470_v41 }
 0x53e   :  { %v472_v45 = vadd.f32 %v2431_v39, %v471_v43 }
 0x540   :  { %v476_v47 = vsel %vm475_vm14, %v2431_v39, %v472_v45 }
 0x541   :  { %v481_v48 = vsel %vm478_vm15, %v480_v46, %v476_v47 }
 0x542   :  { %v482_v50 = vmul.f32 %v2429_v30, %v481_v48 }
 0x543   :  { %v596_v51 = vpop.permute.xlu0 %595 }
 0x544   :  { %2293 = vmatmul.msk.f32.vlgmr.msrb.gmra.mxu2 %vm223_vm3, %v482_v50 }
 0x545   :  { %2298 = vmatpush.xpose.msk.msra.mxu2 %vm223_vm3, %v596_v51 }
 0x549   :  { %2300 = vmatpush.xpose.msk.msrb.mxu2 %vm223_vm3, %v624_v49 }
 0x54c   :  { %2299 = vmatmul.msk.f32.vlgmr.msra.gmra.mxu2 %vm223_vm3, %v594_v52 }
 0x54d   :  { %2306 = vmatpush.xpose.msk.msra.mxu2 %vm223_vm3, %v785_v53 }
 0x56e   :  { %v437_v54 = vpop.xlane.xlu0 %436 }
 0x56f   :  { %v441_v55 = vsub.f32 %v433_v36, %v437_v54 }
 0x571   :  { %v443_v56 = vmul.f32 1.442695, %v441_v55 }
 0x573   :  { %2432 = vpow2.f32 %v443_v56 }
 0x579   :  { %v2433_v57 = vpop.eup %2432 }
 0x57a   :  { %v447_v58 = vsel %vm223_vm3, %v2433_v57, 0.0 }
 0x57b   :  { %448 = vadd.xlane.f32.xlu1 %v447_v58 }
 0x581   :  { %v622_v59 = vpop.permute.xlu0 %621 }
 0x582   :  { %2301 = vmatmul.msk.f32.vlgmr.msrb.gmra.mxu2 %vm223_vm3, %v622_v59 }
 0x594   :  { %782 = vrot.lane.b32.xlu1 %v2764_v34, %s2567_s15 }
 0x59c   :  { %699 = vrot.lane.b32.xlu1 %v2764_v34, %s2568_s16 }
 0x5a4   :  { %812 = vrot.lane.b32.xlu1 %v2758_v33, %s2566_s11 }
 0x5ac   :  { %810 = vrot.lane.b32.xlu1 %v2758_v33, %s2567_s15 }
 0x5c7   :  { %v532_v60 = vpop.f32.mrf.mxu2 }
 0x5cf   :  { %v618_v61 = vpop.f32.mrf.mxu2 }
 0x5d0   :  { %v649_v62 = vmul.f32 0.35355338, %v618_v61 }
 0x5d2   :  { %v651_v63 = vsel %vm223_vm3, %v649_v62, -inf }
 0x5d3   :  { %652 = vmax.xlane.f32.xlu2 %v651_v63 }
 0x5ee   :  { %v449_v2 = vpop.xlane.xlu1 %448 }
 0x5ef   :  { %2434 = vrcp.f32 %v449_v2  ;;  %v464_v6 = vand.u32 2147483648, %v449_v2  ;;  %v462_v8 = vand.u32 2147483647, %v449_v2  ;;  %vm458_vm1 = vweird.f32 %v449_v2 }
 0x5f1   :  { %v465_v10 = vor.u32 1.1754944e-38, %v464_v6  ;;  %vm463_vm5 = vcmp.eq.f32.partialorder %v462_v8, 8.507059e+37 }
 0x5f5   :  { %v2435_v3 = vpop.eup %2434 }
 0x5f6   :  { %v454_v4 = vmul.f32 %v2435_v3, %v449_v2  ;;  %vm459_vm0 = vweird.f32 %v2435_v3 }
 0x5f7   :  { %vm460_vm4 = vmor %vm458_vm1, %vm459_vm0 }
 0x5f8   :  { %v455_v5 = vsub.f32 1.0, %v454_v4 }
 0x5fa   :  { %v456_v7 = vmul.f32 %v2435_v3, %v455_v5  ;;  %v218_v5 = vld [vmem:[%s2605_s25 + $0x10] sm:$0xff] }
 0x5fc   :  { %v457_v9 = vadd.f32 %v2435_v3, %v456_v7 }
 0x5fe   :  { %v461_v11 = vsel %vm460_vm4, %v2435_v3, %v457_v9 }
 0x5ff   :  { %v466_v12 = vsel %vm463_vm5, %v465_v10, %v461_v11 }
 0x600   :  { %v467_v13 = vmul.f32 %v2433_v57, %v466_v12 }
 0x602   :  { %2292 = vmatmul.msk.f32.vlgmr.msrb.gmra.mxu1 %vm223_vm3, %v467_v13 }
 0x603   :  { %772 = vmatpush.msrb.mxu1 %v218_v5 }
 0x605   :  { %v646_v14 = vpop.f32.mrf.mxu2 }
 0x606   :  { %v650_v15 = vmul.f32 0.35355338, %v646_v14  ;;  %v783_v16 = vpop.permute.xlu1 %782 }
 0x607   :  { %2307 = vmatmul.msk.f32.vlgmr.msra.gmra.mxu2 %vm223_vm3, %v783_v16 }
 0x608   :  { %v654_v17 = vsel %vm223_vm3, %v650_v15, -inf }
 0x609   :  { %655 = vmax.xlane.f32.xlu2 %v654_v17 }
 0x60a   :  { %2296 = vmatmul.msk.f32.vlgmr.msra.gmra.mxu1 %vm223_vm3, %v2810_v32 }
 0x60e   :  { %v700_v18 = vpop.permute.xlu1 %699 }
 0x60f   :  { %720 = vmatpush.msra.mxu3 %v700_v18 }
 0x612   :  { %2297 = vmatmul.msk.f32.gmra.mxu1 %vm223_vm3, %v2798_v20 }
 0x616   :  { %v813_v31 = vpop.permute.xlu1 %812 }
 0x646   :  { %v653_v19 = vpop.xlane.xlu2 %652 }
 0x647   :  { %v657_v21 = vsub.f32 %v649_v62, %v653_v19 }
 0x649   :  { %v659_v22 = vmul.f32 1.442695, %v657_v21 }
 0x64b   :  { %2436 = vpow2.f32 %v659_v22 }
 0x651   :  { %v2437_v23 = vpop.eup %2436 }
 0x652   :  { %v663_v24 = vsel %vm223_vm3, %v2437_v23, 0.0 }
 0x653   :  { %664 = vadd.xlane.f32.xlu0 %v663_v24 }
 0x67c   :  { %v656_v25 = vpop.xlane.xlu2 %655 }
 0x67d   :  { %v658_v26 = vsub.f32 %v650_v15, %v656_v25 }
 0x67f   :  { %v661_v27 = vmul.f32 1.442695, %v658_v26  ;;  %v506_v30 = vpop.f32.mrf.mxu1 }
 0x680   :  { %2294 = vmatmul.msk.f32.vlgmr.msrb.gmra.mxu3 %vm223_vm3, %v506_v30 }
 0x681   :  { %2438 = vpow2.f32 %v661_v27  ;;  %2308 = vmatpush.xpose.msk.msrb.mxu3 %vm223_vm3, %v813_v31 }
 0x687   :  { %v2439_v32 = vpop.eup %2438 }
 0x688   :  { %2295 = vmatmul.msk.f32.gmra.mxu3 %vm223_vm3, %v532_v60  ;;  %v666_v20 = vsel %vm223_vm3, %v2439_v32, 0.0 }
 0x689   :  { %667 = vadd.xlane.f32.xlu2 %v666_v20  ;;  %v219_v20 = vld [vmem:[%s2605_s25 + $0x18] sm:$0xff]  ;;  %s3100_s25 = sld [smem:[#allocation6_spill]] }
 0x68a   :  { %v807_v35 = vpop.f32.mrf.mxu2 }
 0x68b   :  { %v838_v36 = vmul.f32 0.35355338, %v807_v35 }
 0x68d   :  { %v840_v37 = vsel %vm223_vm3, %v838_v36, -inf }
 0x68e   :  { %841 = vmax.xlane.f32.xlu1 %v840_v37 }
 0x6a1   :  { %725 = vrot.lane.b32.xlu2 %v2758_v33, %s2568_s16 }
 0x6a7   :  { %914 = vrot.lane.b32.xlu1 %v2758_v33, %s2569_s18  ;;  %v811_v33 = vpop.permute.xlu1 %810 }
 0x6c6   :  { %v665_v38 = vpop.xlane.xlu0 %664 }
 0x6c7   :  { %2440 = vrcp.f32 %v665_v38  ;;  %v680_v42 = vand.u32 2147483648, %v665_v38  ;;  %v678_v44 = vand.u32 2147483647, %v665_v38  ;;  %vm674_vm7 = vweird.f32 %v665_v38 }
 0x6c9   :  { %v681_v46 = vor.u32 1.1754944e-38, %v680_v42  ;;  %vm679_vm9 = vcmp.eq.f32.partialorder %v678_v44, 8.507059e+37 }
 0x6cd   :  { %v2441_v39 = vpop.eup %2440 }
 0x6ce   :  { %v670_v40 = vmul.f32 %v2441_v39, %v665_v38  ;;  %vm675_vm6 = vweird.f32 %v2441_v39 }
 0x6cf   :  { %vm676_vm8 = vmor %vm674_vm7, %vm675_vm6 }
 0x6d0   :  { %v671_v41 = vsub.f32 1.0, %v670_v40 }
 0x6d2   :  { %v672_v43 = vmul.f32 %v2441_v39, %v671_v41 }
 0x6d4   :  { %v673_v45 = vadd.f32 %v2441_v39, %v672_v43 }
 0x6d6   :  { %v677_v47 = vsel %vm676_vm8, %v2441_v39, %v673_v45 }
 0x6d7   :  { %v682_v48 = vsel %vm679_vm9, %v681_v46, %v677_v47 }
 0x6d8   :  { %v683_v49 = vmul.f32 %v2437_v23, %v682_v48  ;;  %v587_v48 = vpop.f32.mrf.mxu1 }
 0x6da   :  { %2302 = vmatmul.msk.f32.vlgmr.msra.gmra.mxu3 %vm223_vm3, %v683_v49 }
 0x6db   :  { %961 = vmatpush.msra.mxu3 %v219_v20 }
 0x6e0   :  { %v590_v49 = vpop.f32.mrf.mxu1 }
 0x6e2   :  { %2309 = vmatmul.msk.f32.vlgmr.msrb.gmra.mxu3 %vm223_vm3, %v811_v33 }
 0x6fc   :  { %v668_v50 = vpop.xlane.xlu2 %667 }
 0x6fd   :  { %2442 = vrcp.f32 %v668_v50  ;;  %v695_v58 = vand.u32 2147483648, %v668_v50  ;;  %v693_v60 = vand.u32 2147483647, %v668_v50  ;;  %vm689_vm11 = vweird.f32 %v668_v50 }
 0x6ff   :  { %v696_v62 = vor.u32 1.1754944e-38, %v695_v58  ;;  %vm694_vm13 = vcmp.eq.f32.partialorder %v693_v60, 8.507059e+37 }
 0x701   :  { %v842_v51 = vpop.xlane.xlu1 %841 }
 0x702   :  { %v846_v52 = vsub.f32 %v838_v36, %v842_v51 }
 0x703   :  { %v2443_v53 = vpop.eup %2442  ;;  %v558_v6 = vpop.f32.mrf.mxu3 }
 0x704   :  { %v685_v54 = vmul.f32 %v2443_v53, %v668_v50  ;;  %v848_v55 = vmul.f32 1.442695, %v846_v52  ;;  %v726_v56 = vpop.permute.xlu2 %725  ;;  %vm690_vm10 = vweird.f32 %v2443_v53  ;;  %v588_v50 = vadd.f32 %v587_v48, %v558_v6  ;;  %v2404_v52 = vld [vmem:[%s2610_s29] ss:$0 sm:$0xff]  ;;  %s3101_s29 = sld [smem:[#allocation7_spill]] }
 0x705   :  { %746 = vmatpush.msrb.mxu0 %v726_v56  ;;  %vm691_vm12 = vmor %vm689_vm11, %vm690_vm10  ;;  %v2407_v48 = vld [vmem:[%s2630_s19] ss:$0 sm:$0xff]  ;;  %s3105_s19 = sld [smem:[#allocation14_spill]] }
 0x706   :  { %v686_v57 = vsub.f32 1.0, %v685_v54  ;;  %2444 = vpow2.f32 %v848_v55 }
 0x708   :  { %v687_v59 = vmul.f32 %v2443_v53, %v686_v57 }
 0x70a   :  { %v688_v61 = vadd.f32 %v2443_v53, %v687_v59  ;;  %v2570_v59 = vmov 32.0  }
 0x70b   :  { %v2857_v7 = vpop.f32.mrf.mxu3 }
 0x70c   :  { %v2445_v63 = vpop.eup %2444  ;;  %v692_v0 = vsel %vm691_vm12, %v2443_v53, %v688_v61  ;;  %vm1093_vm12 = vcmask 523264  }
 0x70d   :  { %v852_v1 = vsel %vm223_vm3, %v2445_v63, 0.0  ;;  %v697_v2 = vsel %vm694_vm13, %v696_v62, %v692_v0 }
 0x70e   :  { %853 = vadd.xlane.f32.xlu0 %v852_v1  ;;  %v698_v3 = vmul.f32 %v2439_v32, %v697_v2 }
 0x710   :  { %2303 = vmatmul.msk.f32.vlgmr.msrb.gmra.mxu0 %vm223_vm3, %v698_v3 }
 0x719   :  { %v915_v4 = vpop.permute.xlu1 %914 }
 0x71a   :  { %935 = vmatpush.msrb.mxu2 %v915_v4 }
 0x722   :  { %888 = vrot.lane.b32.xlu0 %v2764_v34, %s2569_s18 }
 0x75d   :  { %v722_v8 = vpop.f32.mrf.mxu3 }
 0x75e   :  { %2304 = vmatmul.msk.f32.vlgmr.msrb.gmra.mxu1 %vm223_vm3, %v722_v8  ;;  %v591_v8 = vadd.f32 %v590_v49, %v2857_v7 }
 0x765   :  { %v835_v9 = vpop.f32.mrf.mxu3 }
 0x766   :  { %v839_v10 = vmul.f32 0.35355338, %v835_v9 }
 0x768   :  { %v843_v11 = vsel %vm223_vm3, %v839_v10, -inf }
 0x769   :  { %844 = vmax.xlane.f32.xlu0 %v843_v11 }
 0x781   :  { %v854_v12 = vpop.xlane.xlu0 %853 }
 0x782   :  { %2446 = vrcp.f32 %v854_v12  ;;  %v869_v16 = vand.u32 2147483648, %v854_v12  ;;  %v867_v17 = vand.u32 2147483647, %v854_v12  ;;  %vm863_vm15 = vweird.f32 %v854_v12 }
 0x784   :  { %v870_v21 = vor.u32 1.1754944e-38, %v869_v16  ;;  %vm868_vm1 = vcmp.eq.f32.partialorder %v867_v17, 8.507059e+37  ;;  %v1044_v16 = vld [vmem:[%s2625_s14 + $0x10] sm:$0xff]  ;;  %v1042_v17 = vld [vmem:[%s2625_s14] sm:$0xff] }
 0x788   :  { %v2447_v13 = vpop.eup %2446 }
 0x789   :  { %v859_v14 = vmul.f32 %v2447_v13, %v854_v12  ;;  %vm864_vm14 = vweird.f32 %v2447_v13 }
 0x78a   :  { %vm865_vm0 = vmor %vm863_vm15, %vm864_vm14 }
 0x78b   :  { %v860_v15 = vsub.f32 1.0, %v859_v14 }
 0x78d   :  { %v861_v34 = vmul.f32 %v2447_v13, %v860_v15  ;;  %v748_v18 = vpop.f32.mrf.mxu0  ;;  %v1045_v15 = vld [vmem:[%s2625_s14 + $0x18] sm:$0xff] }
 0x78e   :  { %2305 = vmatmul.msk.f32.gmra.mxu1 %vm223_vm3, %v748_v18 }
 0x78f   :  { %v862_v19 = vadd.f32 %v2447_v13, %v861_v34  ;;  %v1043_v34 = vld [vmem:[%s2625_s14 + $0x8] sm:$0xff]  ;;  %s3104_s14 = sld [smem:[#allocation12_spill]] }
 0x791   :  { %v866_v22 = vsel %vm865_vm0, %v2447_v13, %v862_v19 }
 0x792   :  { %v871_v23 = vsel %vm868_vm1, %v870_v21, %v866_v22 }
 0x793   :  { %v872_v24 = vmul.f32 %v2445_v63, %v871_v23 }
 0x794   :  { %v889_v25 = vpop.permute.xlu0 %888 }
 0x795   :  { %909 = vmatpush.msra.mxu0 %v889_v25 }
 0x796   :  { %2310 = vmatmul.msk.f32.vlgmr.msra.gmra.mxu0 %vm223_vm3, %v872_v24 }
 0x797   :  { %1068 = vmatpush.msrb.mxu0 %v1045_v15 }
 0x799   :  { %1069 = vmatpush.msrb.mxu0 %v1044_v16 }
 0x79b   :  { %1070 = vmatpush.msrb.mxu0 %v1043_v34 }
 0x79d   :  { %1071 = vmatpush.msrb.mxu0 %v1042_v17  ;;  %v1184_v17 = vld [vmem:[%s2655_s20 + $0x18] sm:$0xff] }
 0x79e   :  { %1207 = vmatpush.msra.mxu2 %v1184_v17 }
 0x7db   :  { %v774_v33 = vpop.f32.mrf.mxu1 }
 0x7dc   :  { %v845_v26 = vpop.xlane.xlu0 %844  ;;  %v780_v51 = vadd.f32 %v774_v33, %v588_v50 }
 0x7dd   :  { %v847_v27 = vsub.f32 %v839_v10, %v845_v26  ;;  %v2405_v26 = vld [vmem:[%s2615_s3] ss:$0 sm:$0xff]  ;;  %s3102_s3 = sld [smem:[#allocation8_spill]] }
 0x7df   :  { %v850_v30 = vmul.f32 1.442695, %v847_v27 }
 0x7e1   :  { %2448 = vpow2.f32 %v850_v30 }
 0x7e7   :  { %v2449_v31 = vpop.eup %2448 }
 0x7e8   :  { %v855_v32 = vsel %vm223_vm3, %v2449_v31, 0.0 }
 0x7e9   :  { %856 = vadd.xlane.f32.xlu2 %v855_v32 }
 0x80b   :  { %v777_v6 = vpop.f32.mrf.mxu1 }
 0x80c   :  { %v781_v9 = vadd.f32 %v777_v6, %v591_v8 }
 0x813   :  { %v911_v35 = vpop.f32.mrf.mxu0 }
 0x814   :  { %2312 = vmatmul.msk.f32.vlgmr.msra.gmra.mxu3 %vm223_vm3, %v911_v35  ;;  %v1088_v35 = vld [vmem:[%s2635_s24 + $0x38] sm:$0xff] }
 0x815   :  { %1108 = vmatpush.msra.mxu1 %v1088_v35  ;;  %v2410_v35 = vld [vmem:[%s3100_s25] ss:$0 sm:$0xff] }
 0x85c   :  { %v857_v36 = vpop.xlane.xlu2 %856 }
 0x85d   :  { %2450 = vrcp.f32 %v857_v36  ;;  %v884_v40 = vand.u32 2147483648, %v857_v36  ;;  %v882_v42 = vand.u32 2147483647, %v857_v36  ;;  %vm878_vm5 = vweird.f32 %v857_v36 }
 0x85e   :  { %2452 = vrcp.f32 %v2570_v59 }
 0x85f   :  { %v885_v44 = vor.u32 1.1754944e-38, %v884_v40  ;;  %vm883_vm7 = vcmp.eq.f32.partialorder %v882_v42, 8.507059e+37 }
 0x863   :  { %v2451_v37 = vpop.eup %2450 }
 0x864   :  { %v874_v38 = vmul.f32 %v2451_v37, %v857_v36  ;;  %vm879_vm4 = vweird.f32 %v2451_v37  ;;  %v2453_v60 = vpop.eup %2452  ;;  %v1087_v36 = vld [vmem:[%s2635_s24 + $0x30] sm:$0xff] }
 0x865   :  { %vm880_vm6 = vmor %vm878_vm5, %vm879_vm4  ;;  %v988_v61 = vmul.f32 32.0, %v2453_v60  ;;  %vm992_vm8 = vweird.f32 %v2453_v60  ;;  %1109 = vmatpush.msra.mxu1 %v1087_v36 }
 0x866   :  { %v875_v39 = vsub.f32 1.0, %v874_v38  ;;  %v1085_v38 = vld [vmem:[%s2635_s24 + $0x20] sm:$0xff] }
 0x867   :  { %v989_v62 = vsub.f32 1.0, %v988_v61 }
 0x868   :  { %v876_v41 = vmul.f32 %v2451_v37, %v875_v39  ;;  %v1084_v39 = vld [vmem:[%s2635_s24 + $0x18] sm:$0xff] }
 0x869   :  { %v990_v63 = vmul.f32 %v2453_v60, %v989_v62 }
 0x86a   :  { %v877_v43 = vadd.f32 %v2451_v37, %v876_v41 }
 0x86b   :  { %v991_v0 = vadd.f32 %v2453_v60, %v990_v63 }
 0x86c   :  { %v881_v45 = vsel %vm880_vm6, %v2451_v37, %v877_v43  ;;  %v1086_v37 = vld [vmem:[%s2635_s24 + $0x28] sm:$0xff] }
 0x86d   :  { %v886_v46 = vsel %vm883_vm7, %v885_v44, %v881_v45  ;;  %v2871_v1 = vsel %vm992_vm8, %v2453_v60, %v991_v0  ;;  %1110 = vmatpush.msra.mxu1 %v1086_v37  ;;  %v1083_v45 = vld [vmem:[%s2635_s24 + $0x10] sm:$0xff]  ;;  %v2408_v0 = vld [vmem:[%s2640_s30] ss:$0 sm:$0xff]  ;;  %s3107_s30 = sld [smem:[#allocation11_spill]] }
 0x86e   :  { %v887_v47 = vmul.f32 %v2449_v31, %v886_v46  ;;  %v2406_v31 = vld [vmem:[%s2620_s8] ss:$0 sm:$0xff]  ;;  %v1082_v46 = vld [vmem:[%s2635_s24 + $0x8] sm:$0xff]  ;;  %s3103_s8 = sld [smem:[#allocation9_spill]] }
 0x86f   :  { %1111 = vmatpush.msra.mxu1 %v1085_v38 }
 0x870   :  { %2311 = vmatmul.msk.f32.vlgmr.msrb.gmra.mxu2 %vm223_vm3, %v887_v47  ;;  %v1081_v47 = vld [vmem:[%s2635_s24] sm:$0xff]  ;;  %s3106_s24 = sld [smem:[#allocation10_spill]] }
 0x871   :  { %1112 = vmatpush.msra.mxu1 %v1084_v39 }
 0x873   :  { %1113 = vmatpush.msra.mxu1 %v1083_v45 }
 0x875   :  { %1114 = vmatpush.msra.mxu1 %v1082_v46 }
 0x877   :  { %1115 = vmatpush.msra.mxu1 %v1081_v47 }
 0x897   :  { %v963_v53 = vpop.f32.mrf.mxu3 }
 0x898   :  { %v969_v54 = vadd.f32 %v963_v53, %v780_v51 }
 0x89a   :  { %v975_v55 = vadd.f32 %v2404_v52, %v969_v54 }
 0x89c   :  { %v977_v56 = vadd.f32 %v975_v55, %v2749_v28 }
 0x89e   :  { %v981_v57 = vsel %vm186_vm2, %v977_v56, 0.0 }
 0x89f   :  { %982 = vadd.xlane.f32.xlu1 %v981_v57 }
 0x8f3   :  { %v937_v58 = vpop.f32.mrf.mxu2 }
 0x8f4   :  { %2313 = vmatmul.msk.f32.gmra.mxu3 %vm223_vm3, %v937_v58 }
 0x912   :  { %v983_v2 = vpop.xlane.xlu1 %982 }
 0x913   :  { %v994_v28 = vmul.f32 %v2871_v1, %v983_v2 }
 0x915   :  { %v996_v3 = vsub.f32 %v977_v56, %v994_v28 }
 0x917   :  { %v998_v4 = vmul.f32 %v996_v3, %v996_v3 }
 0x919   :  { %v1000_v5 = vsel %vm186_vm2, %v998_v4, 0.0 }
 0x91a   :  { %1001 = vadd.xlane.f32.xlu2 %v1000_v5 }
 0x977   :  { %v966_v10 = vpop.f32.mrf.mxu3 }
 0x978   :  { %v970_v11 = vadd.f32 %v966_v10, %v781_v9 }
 0x97a   :  { %v976_v12 = vadd.f32 %v2404_v52, %v970_v11 }
 0x97c   :  { %v978_v13 = vadd.f32 %v976_v12, %v2753_v29 }
 0x97e   :  { %v984_v14 = vsel %vm186_vm2, %v978_v13, 0.0 }
 0x97f   :  { %985 = vadd.xlane.f32.xlu0 %v984_v14 }
 0x98d   :  { %v1002_v18 = vpop.xlane.xlu2 %1001 }
 0x98e   :  { %v1006_v7 = vmul.f32 %v1002_v18, %v2871_v1  ;;  %v1183_v18 = vld [vmem:[%s2655_s20 + $0x10] sm:$0xff] }
 0x98f   :  { %1208 = vmatpush.msra.mxu2 %v1183_v18 }
 0x990   :  { %v1008_v19 = vadd.f32 1e-05, %v1006_v7  ;;  %v1182_v7 = vld [vmem:[%s2655_s20 + $0x8] sm:$0xff] }
 0x991   :  { %1209 = vmatpush.msra.mxu2 %v1182_v7 }
 0x992   :  { %2454 = vrsqrt.f32 %v1008_v19  ;;  %vm1016_vm10 = vweird.f32 %v1008_v19 }
 0x998   :  { %v2455_v21 = vpop.eup %2454 }
 0x999   :  { %v1011_v29 = vmul.f32 %v2455_v21, %v1008_v19  ;;  %vm1017_vm9 = vweird.f32 %v2455_v21  ;;  %v1181_v19 = vld [vmem:[%s2655_s20] sm:$0xff]  ;;  %s3109_s20 = sld [smem:[#allocation15_spill]] }
 0x99a   :  { %vm1018_vm11 = vmor %vm1016_vm10, %vm1017_vm9  ;;  %1210 = vmatpush.msra.mxu2 %v1181_v19 }
 0x99b   :  { %v1012_v22 = vmul.f32 %v2455_v21, %v1011_v29 }
 0x99d   :  { %v1013_v23 = vmul.f32 0.5, %v1012_v22 }
 0x99f   :  { %v1014_v24 = vsub.f32 1.5, %v1013_v23 }
 0x9a1   :  { %v1015_v25 = vmul.f32 %v2455_v21, %v1014_v24 }
 0x9a3   :  { %v1019_v27 = vsel %vm1018_vm11, %v2455_v21, %v1015_v25 }
 0x9a4   :  { %v1030_v30 = vmul.f32 %v1019_v27, %v996_v3 }
 0x9a6   :  { %v1035_v32 = vmul.f32 %v2405_v26, %v1030_v30 }
 0x9a8   :  { %v1040_v20 = vadd.f32 %v2406_v31, %v1035_v32 }
 0x9aa   :  { %2314 = vmatmul.msk.f32.vlgmr.msrb.gmra.mxu0 %vm186_vm2, %v1040_v20 }
 0x9f2   :  { %v986_v40 = vpop.xlane.xlu0 %985 }
 0x9f3   :  { %v995_v41 = vmul.f32 %v2871_v1, %v986_v40 }
 0x9f5   :  { %v997_v42 = vsub.f32 %v978_v13, %v995_v41 }
 0x9f7   :  { %v999_v43 = vmul.f32 %v997_v42, %v997_v42 }
 0x9f9   :  { %v1003_v44 = vsel %vm186_vm2, %v999_v43, 0.0  ;;  %v2411_v43 = vld [vmem:[%s3101_s29] ss:$0 sm:$0xff] }
 0x9fa   :  { %1004 = vadd.xlane.f32.xlu2 %v1003_v44 }
 0xa27   :  { %v1073_v49 = vpop.f32.mrf.mxu0 }
 0xa28   :  { %v1074_v33 = vadd.f32 %v2407_v48, %v1073_v49 }
 0xa2a   :  { %v1079_v50 = vmax.f32 %v1074_v33, 0.0 }
 0xa2c   :  { %2316 = vmatmul.msk.f32.vlgmr.msra.gmra.mxu1 %vm1093_vm12, %v1079_v50 }
 0xa6d   :  { %v1005_v51 = vpop.xlane.xlu2 %1004 }
 0xa6e   :  { %v1007_v52 = vmul.f32 %v1005_v51, %v2871_v1 }
 0xa70   :  { %v1009_v53 = vadd.f32 1e-05, %v1007_v52 }
 0xa72   :  { %2456 = vrsqrt.f32 %v1009_v53  ;;  %vm1026_vm14 = vweird.f32 %v1009_v53 }
 0xa78   :  { %v2457_v54 = vpop.eup %2456 }
 0xa79   :  { %v1021_v55 = vmul.f32 %v2457_v54, %v1009_v53  ;;  %vm1027_vm13 = vweird.f32 %v2457_v54 }
 0xa7a   :  { %vm1028_vm15 = vmor %vm1026_vm14, %vm1027_vm13 }
 0xa7b   :  { %v1022_v56 = vmul.f32 %v2457_v54, %v1021_v55 }
 0xa7d   :  { %v1023_v57 = vmul.f32 0.5, %v1022_v56 }
 0xa7f   :  { %v1024_v58 = vsub.f32 1.5, %v1023_v57 }
 0xa81   :  { %v1025_v59 = vmul.f32 %v2457_v54, %v1024_v58 }
 0xa83   :  { %v1029_v60 = vsel %vm1028_vm15, %v2457_v54, %v1025_v59 }
 0xa84   :  { %v1031_v61 = vmul.f32 %v1029_v60, %v997_v42 }
 0xa86   :  { %v1036_v62 = vmul.f32 %v2405_v26, %v1031_v61 }
 0xa88   :  { %v1041_v63 = vadd.f32 %v2406_v31, %v1036_v62  ;;  %v2409_v31 = vld [vmem:[%s2645_s6] ss:$0 sm:$0xff]  ;;  %s3108_s6 = sld [smem:[#allocation13_spill]] }
 0xa8a   :  { %2315 = vmatmul.msk.f32.gmra.mxu0 %vm186_vm2, %v1041_v63 }
 0xaa9   :  { %v1117_v2 = vpop.f32.mrf.mxu1 }
 0xaaa   :  { %v1118_v28 = vadd.f32 %v2408_v0, %v1117_v2 }
 0xaac   :  { %v1123_v3 = vadd.f32 %v1118_v28, %v1040_v20 }
 0xaae   :  { %v1127_v4 = vsel %vm186_vm2, %v1123_v3, 0.0 }
 0xaaf   :  { %1128 = vadd.xlane.f32.xlu0 %v1127_v4 }
 0xb07   :  { %v1076_v5 = vpop.f32.mrf.mxu0 }
 0xb08   :  { %v1077_v6 = vadd.f32 %v2407_v48, %v1076_v5 }
 0xb0a   :  { %v1080_v8 = vmax.f32 %v1077_v6, 0.0 }
 0xb0c   :  { %2317 = vmatmul.msk.f32.gmra.mxu1 %vm1093_vm12, %v1080_v8 }
 0xb22   :  { %v1129_v9 = vpop.xlane.xlu0 %1128 }
 0xb23   :  { %v1133_v10 = vmul.f32 %v1129_v9, %v2871_v1 }
 0xb25   :  { %v1135_v11 = vsub.f32 %v1123_v3, %v1133_v10 }
 0xb27   :  { %v1137_v12 = vmul.f32 %v1135_v11, %v1135_v11 }
 0xb29   :  { %v1139_v13 = vsel %vm186_vm2, %v1137_v12, 0.0 }
 0xb2a   :  { %1140 = vadd.xlane.f32.xlu2 %v1139_v13 }
 0xb89   :  { %v1120_v14 = vpop.f32.mrf.mxu1 }
 0xb8a   :  { %v1121_v15 = vadd.f32 %v2408_v0, %v1120_v14 }
 0xb8c   :  { %v1124_v16 = vadd.f32 %v1121_v15, %v1041_v63 }
 0xb8e   :  { %v1130_v34 = vsel %vm186_vm2, %v1124_v16, 0.0 }
 0xb8f   :  { %1131 = vadd.xlane.f32.xlu0 %v1130_v34 }
 0xb9d   :  { %v1141_v21 = vpop.xlane.xlu2 %1140 }
 0xb9e   :  { %v1145_v29 = vmul.f32 %v1141_v21, %v2871_v1 }
 0xba0   :  { %v1147_v22 = vadd.f32 1e-05, %v1145_v29 }
 0xba2   :  { %2458 = vrsqrt.f32 %v1147_v22  ;;  %vm1155_vm1 = vweird.f32 %v1147_v22 }
 0xba8   :  { %v2459_v23 = vpop.eup %2458 }
 0xba9   :  { %v1150_v24 = vmul.f32 %v2459_v23, %v1147_v22  ;;  %vm1156_vm0 = vweird.f32 %v2459_v23 }
 0xbaa   :  { %vm1157_vm4 = vmor %vm1155_vm1, %vm1156_vm0 }
 0xbab   :  { %v1151_v25 = vmul.f32 %v2459_v23, %v1150_v24 }
 0xbad   :  { %v1152_v26 = vmul.f32 0.5, %v1151_v25 }
 0xbaf   :  { %v1153_v27 = vsub.f32 1.5, %v1152_v26 }
 0xbb1   :  { %v1154_v30 = vmul.f32 %v2459_v23, %v1153_v27 }
 0xbb3   :  { %v1158_v32 = vsel %vm1157_vm4, %v2459_v23, %v1154_v30 }
 0xbb4   :  { %v1169_v20 = vmul.f32 %v1158_v32, %v1135_v11 }
 0xbb6   :  { %v1174_v36 = vmul.f32 %v2409_v31, %v1169_v20 }
 0xbb8   :  { %v2913_v37 = vadd.f32 %v2410_v35, %v1174_v36 }
 0xbba   :  { %2318 = vmatmul.msk.f32.vlgmr.msra.gmra.mxu2 %vm186_vm2, %v2913_v37 }
 0xc02   :  { %v1132_v38 = vpop.xlane.xlu0 %1131 }
 0xc03   :  { %v1134_v39 = vmul.f32 %v1132_v38, %v2871_v1 }
 0xc05   :  { %v1136_v40 = vsub.f32 %v1124_v16, %v1134_v39 }
 0xc07   :  { %v1138_v41 = vmul.f32 %v1136_v40, %v1136_v40 }
 0xc09   :  { %v1142_v42 = vsel %vm186_vm2, %v1138_v41, 0.0 }
 0xc0a   :  { %1143 = vadd.xlane.f32.xlu2 %v1142_v42 }
 0xc3d   :  { %v1212_v44 = vpop.f32.mrf.mxu2 }
 0xc3e   :  { %v2920_v45 = vadd.f32 %v2411_v43, %v1212_v44 }
 0xc40   :  { %1378 = vrot.lane.b32.xlu2 %v2920_v45, %s2562_s17  ;;  %1380 = vrot.lane.b32.xlu1 %v2920_v45, %s2561_s9 }
 0xc41   :  { %1223 = vrot.lane.b32.xlu0 %v2920_v45, %s2560_s5 }
 0xc7d   :  { %v1144_v46 = vpop.xlane.xlu2 %1143 }
 0xc7e   :  { %v1146_v47 = vmul.f32 %v1144_v46, %v2871_v1 }
 0xc80   :  { %v1148_v48 = vadd.f32 1e-05, %v1146_v47 }
 0xc82   :  { %2460 = vrsqrt.f32 %v1148_v48  ;;  %vm1165_vm6 = vweird.f32 %v1148_v48 }
 0xc88   :  { %v2461_v49 = vpop.eup %2460 }
 0xc89   :  { %v1160_v33 = vmul.f32 %v2461_v49, %v1148_v48  ;;  %vm1166_vm5 = vweird.f32 %v2461_v49 }
 0xc8a   :  { %vm1167_vm7 = vmor %vm1165_vm6, %vm1166_vm5 }
 0xc8b   :  { %v1161_v50 = vmul.f32 %v2461_v49, %v1160_v33 }
 0xc8d   :  { %v1162_v51 = vmul.f32 0.5, %v1161_v50 }
 0xc8f   :  { %v1163_v52 = vsub.f32 1.5, %v1162_v51 }
 0xc91   :  { %v1164_v53 = vmul.f32 %v2461_v49, %v1163_v52 }
 0xc93   :  { %v1168_v54 = vsel %vm1167_vm7, %v2461_v49, %v1164_v53 }
 0xc94   :  { %v1170_v55 = vmul.f32 %v1168_v54, %v1136_v40 }
 0xc96   :  { %v1175_v56 = vmul.f32 %v2409_v31, %v1170_v55 }
 0xc98   :  { %v2929_v57 = vadd.f32 %v2410_v35, %v1175_v56 }
 0xc9a   :  { %2319 = vmatmul.msk.f32.gmra.mxu2 %vm186_vm2, %v2929_v57  ;;  %v1379_v60 = vpop.permute.xlu2 %1378 }
 0xcb2   :  { %v1381_v58 = vpop.permute.xlu1 %1380 }
 0xcb3   :  { %v1224_v59 = vpop.permute.xlu0 %1223 }
 0xcb4   :  { %2320 = vmatpush.xpose.msk.msrb.mxu3 %vm223_vm3, %v1224_v59 }
 0xcb7   :  { %2321 = vmatmul.msk.f32.vlgmr.msrb.gmra.mxu3 %vm223_vm3, %v2920_v45 }
 0xcb8   :  { %2326 = vmatpush.xpose.msk.msra.mxu3 %vm223_vm3, %v1381_v58 }
 0xcbf   :  { %2327 = vmatmul.msk.f32.vlgmr.msra.gmra.mxu3 %vm223_vm3, %v1379_v60 }
 0xd1d   :  { %v1215_v61 = vpop.f32.mrf.mxu2 }
 0xd1e   :  { %v2938_v62 = vadd.f32 %v2411_v43, %v1215_v61 }
 0xd20   :  { %1250 = vrot.lane.b32.xlu0 %v2938_v62, %s2560_s5 }
 0xd3a   :  { %v1246_v63 = vpop.f32.mrf.mxu3 }
 0xd3b   :  { %v1276_v28 = vmul.f32 0.35355338, %v1246_v63  ;;  %v1218_v63 = vld [vmem:[%s3102_s3] sm:$0xff] }
 0xd3d   :  { %v1278_v4 = vsel %vm223_vm3, %v1276_v28, -inf }
 0xd42   :  { %v1403_v0 = vpop.f32.mrf.mxu3 }
 0xd43   :  { %v1434_v2 = vmul.f32 0.35355338, %v1403_v0  ;;  %v1219_v0 = vld [vmem:[%s3102_s3 + $0x8] sm:$0xff] }
 0xd44   :  { %1557 = vmatpush.msrb.mxu3 %v1219_v0 }
 0xd45   :  { %v1436_v3 = vsel %vm223_vm3, %v1434_v2, -inf }
 0xd46   :  { %1437 = vmax.xlane.f32.xlu2 %v1436_v3 }
 0xd4a   :  { %1279 = vmax.xlane.f32.xlu0 %v1278_v4 }
 0xd5e   :  { %1406 = vrot.lane.b32.xlu2 %v2938_v62, %s2562_s17  ;;  %1408 = vrot.lane.b32.xlu0 %v2938_v62, %s2561_s9 }
 0xd66   :  { %1596 = vrot.lane.b32.xlu2 %v2920_v45, %s2565_s10  ;;  %1484 = vrot.lane.b32.xlu0 %v2920_v45, %s2563_s21 }
 0xd6e   :  { %1594 = vrot.lane.b32.xlu0 %v2920_v45, %s2564_s7 }
 0xd92   :  { %v1251_v5 = vpop.permute.xlu0 %1250 }
 0xd93   :  { %2322 = vmatpush.xpose.msk.msra.mxu0 %vm223_vm3, %v1251_v5 }
 0xd96   :  { %2323 = vmatmul.msk.f32.vlgmr.msra.gmra.mxu0 %vm223_vm3, %v2938_v62 }
 0xdb9   :  { %v1438_v6 = vpop.xlane.xlu2 %1437 }
 0xdba   :  { %v1442_v10 = vsub.f32 %v1434_v2, %v1438_v6 }
 0xdbc   :  { %v1444_v12 = vmul.f32 1.442695, %v1442_v10 }
 0xdbd   :  { %v1280_v8 = vpop.xlane.xlu0 %1279 }
 0xdbe   :  { %v1284_v9 = vsub.f32 %v1276_v28, %v1280_v8 }
 0xdc0   :  { %v1286_v11 = vmul.f32 1.442695, %v1284_v9 }
 0xdc1   :  { %v1407_v17 = vpop.permute.xlu2 %1406 }
 0xdc2   :  { %2462 = vpow2.f32 %v1286_v11 }
 0xdc3   :  { %2464 = vpow2.f32 %v1444_v12 }
 0xdc8   :  { %v2463_v13 = vpop.eup %2462 }
 0xdc9   :  { %v1290_v14 = vsel %vm223_vm3, %v2463_v13, 0.0  ;;  %v2465_v15 = vpop.eup %2464  ;;  %v1597_v50 = vpop.permute.xlu2 %1596 }
 0xdca   :  { %1291 = vadd.xlane.f32.xlu1 %v1290_v14  ;;  %v1448_v34 = vsel %vm223_vm3, %v2465_v15, 0.0 }
 0xdd0   :  { %v1409_v16 = vpop.permute.xlu0 %1408 }
 0xdd1   :  { %2328 = vmatpush.xpose.msk.msrb.mxu0 %vm223_vm3, %v1409_v16 }
 0xdd2   :  { %1449 = vadd.xlane.f32.xlu1 %v1448_v34 }
 0xdd4   :  { %2329 = vmatmul.msk.f32.vlgmr.msrb.gmra.mxu0 %vm223_vm3, %v1407_v17 }
 0xdd5   :  { %1586 = vmatpush.msra.mxu0 %v1218_v63 }
 0xdd8   :  { %v1485_v49 = vpop.permute.xlu0 %1484 }
 0xde0   :  { %v1595_v55 = vpop.permute.xlu0 %1594 }
 0xdeb   :  { %1326 = vrot.lane.b32.xlu1 %v2920_v45, %s2559_s0 }
 0xdf3   :  { %1352 = vrot.lane.b32.xlu1 %v2938_v62, %s2559_s0 }
 0xe13   :  { %v1273_v18 = vpop.f32.mrf.mxu0 }
 0xe14   :  { %v1277_v7 = vmul.f32 0.35355338, %v1273_v18 }
 0xe16   :  { %v1281_v19 = vsel %vm223_vm3, %v1277_v7, -inf }
 0xe17   :  { %1282 = vmax.xlane.f32.xlu2 %v1281_v19 }
 0xe3d   :  { %v1292_v21 = vpop.xlane.xlu1 %1291 }
 0xe3e   :  { %2466 = vrcp.f32 %v1292_v21  ;;  %v1307_v35 = vand.u32 2147483648, %v1292_v21  ;;  %vm1301_vm9 = vweird.f32 %v1292_v21  ;;  %v1305_v38 = vand.u32 2147483647, %v1292_v21 }
 0xe40   :  { %v1308_v41 = vor.u32 1.1754944e-38, %v1307_v35  ;;  %vm1306_vm11 = vcmp.eq.f32.partialorder %v1305_v38, 8.507059e+37 }
 0xe44   :  { %v2467_v29 = vpop.eup %2466 }
 0xe45   :  { %v1450_v22 = vpop.xlane.xlu1 %1449  ;;  %v1297_v23 = vmul.f32 %v2467_v29, %v1292_v21  ;;  %vm1302_vm8 = vweird.f32 %v2467_v29 }
 0xe46   :  { %2468 = vrcp.f32 %v1450_v22  ;;  %vm1303_vm10 = vmor %vm1301_vm9, %vm1302_vm8  ;;  %v1465_v44 = vand.u32 2147483648, %v1450_v22  ;;  %vm1459_vm14 = vweird.f32 %v1450_v22  ;;  %v1463_v46 = vand.u32 2147483647, %v1450_v22 }
 0xe47   :  { %v1298_v24 = vsub.f32 1.0, %v1297_v23 }
 0xe48   :  { %v1466_v51 = vor.u32 1.1754944e-38, %v1465_v44  ;;  %vm1464_vm0 = vcmp.eq.f32.partialorder %v1463_v46, 8.507059e+37 }
 0xe49   :  { %v1299_v26 = vmul.f32 %v2467_v29, %v1298_v24 }
 0xe4b   :  { %v1300_v32 = vadd.f32 %v2467_v29, %v1299_v26 }
 0xe4c   :  { %v2469_v25 = vpop.eup %2468 }
 0xe4d   :  { %v1455_v27 = vmul.f32 %v2469_v25, %v1450_v22  ;;  %v1304_v39 = vsel %vm1303_vm10, %v2467_v29, %v1300_v32  ;;  %vm1460_vm13 = vweird.f32 %v2469_v25 }
 0xe4e   :  { %v1309_v42 = vsel %vm1306_vm11, %v1308_v41, %v1304_v39  ;;  %vm1461_vm15 = vmor %vm1459_vm14, %vm1460_vm13 }
 0xe4f   :  { %v1456_v20 = vsub.f32 1.0, %v1455_v27  ;;  %v1310_v48 = vmul.f32 %v2463_v13, %v1309_v42 }
 0xe51   :  { %v1431_v30 = vpop.f32.mrf.mxu0  ;;  %v1457_v40 = vmul.f32 %v2469_v25, %v1456_v20 }
 0xe52   :  { %v1435_v31 = vmul.f32 0.35355338, %v1431_v30 }
 0xe53   :  { %v1458_v43 = vadd.f32 %v2469_v25, %v1457_v40 }
 0xe54   :  { %v1439_v36 = vsel %vm223_vm3, %v1435_v31, -inf }
 0xe55   :  { %1440 = vmax.xlane.f32.xlu1 %v1439_v36  ;;  %v1462_v33 = vsel %vm1461_vm15, %v2469_v25, %v1458_v43 }
 0xe56   :  { %v1467_v52 = vsel %vm1464_vm0, %v1466_v51, %v1462_v33 }
 0xe57   :  { %v1468_v54 = vmul.f32 %v2465_v15, %v1467_v52 }
 0xe5d   :  { %v1327_v47 = vpop.permute.xlu1 %1326 }
 0xe5e   :  { %1347 = vmatpush.msrb.mxu1 %v1327_v47 }
 0xe5f   :  { %2324 = vmatmul.msk.f32.vlgmr.msrb.gmra.mxu1 %vm223_vm3, %v1310_v48 }
 0xe60   :  { %1505 = vmatpush.msra.mxu1 %v1485_v49 }
 0xe62   :  { %2336 = vmatpush.xpose.msk.msrb.mxu1 %vm223_vm3, %v1597_v50 }
 0xe65   :  { %v1353_v53 = vpop.permute.xlu1 %1352 }
 0xe66   :  { %1373 = vmatpush.msrb.mxu2 %v1353_v53 }
 0xe67   :  { %2330 = vmatmul.msk.f32.vlgmr.msra.gmra.mxu1 %vm223_vm3, %v1468_v54 }
 0xe6e   :  { %1622 = vrot.lane.b32.xlu1 %v2938_v62, %s2564_s7 }
 0xe6f   :  { %2337 = vmatmul.msk.f32.vlgmr.msrb.gmra.mxu1 %vm223_vm3, %v1595_v55 }
 0xe76   :  { %1783 = vrot.lane.b32.xlu1 %v2920_v45, %s2567_s15 }
 0xe7e   :  { %1813 = vrot.lane.b32.xlu1 %v2938_v62, %s2566_s11 }
 0xe8a   :  { %v1283_v56 = vpop.xlane.xlu2 %1282 }
 0xe8b   :  { %v1285_v58 = vsub.f32 %v1277_v7, %v1283_v56 }
 0xe8d   :  { %v1288_v59 = vmul.f32 1.442695, %v1285_v58 }
 0xe8f   :  { %2470 = vpow2.f32 %v1288_v59 }
 0xe95   :  { %v2471_v60 = vpop.eup %2470 }
 0xe96   :  { %v1293_v61 = vsel %vm223_vm3, %v2471_v60, 0.0 }
 0xe97   :  { %1294 = vadd.xlane.f32.xlu0 %v1293_v61 }
 0xec8   :  { %v1441_v2 = vpop.xlane.xlu1 %1440 }
 0xec9   :  { %v1443_v28 = vsub.f32 %v1435_v31, %v1441_v2 }
 0xecb   :  { %v1446_v3 = vmul.f32 1.442695, %v1443_v28 }
 0xecd   :  { %2472 = vpow2.f32 %v1446_v3 }
 0xed3   :  { %v2473_v4 = vpop.eup %2472 }
 0xed4   :  { %v1451_v5 = vsel %vm223_vm3, %v2473_v4, 0.0 }
 0xed5   :  { %1452 = vadd.xlane.f32.xlu0 %v1451_v5 }
 0xedc   :  { %v1349_v6 = vpop.f32.mrf.mxu1 }
 0xedd   :  { %2334 = vmatmul.msk.f32.vlgmr.msra.gmra.mxu0 %vm223_vm3, %v1349_v6 }
 0xee0   :  { %v1623_v39 = vpop.permute.xlu1 %1622 }
 0xee4   :  { %v1507_v8 = vpop.f32.mrf.mxu1 }
 0xee5   :  { %2332 = vmatmul.msk.f32.vlgmr.msrb.gmra.mxu3 %vm223_vm3, %v1507_v8 }
 0xee8   :  { %v1784_v47 = vpop.permute.xlu1 %1783 }
 0xee9   :  { %1624 = vrot.lane.b32.xlu0 %v2938_v62, %s2565_s10 }
 0xeec   :  { %v1619_v9 = vpop.f32.mrf.mxu1 }
 0xeed   :  { %v1650_v10 = vmul.f32 0.35355338, %v1619_v9 }
 0xeef   :  { %v1652_v11 = vsel %vm223_vm3, %v1650_v10, -inf }
 0xef0   :  { %1653 = vmax.xlane.f32.xlu2 %v1652_v11  ;;  %v1814_v33 = vpop.permute.xlu1 %1813 }
 0xf08   :  { %1510 = vrot.lane.b32.xlu2 %v2938_v62, %s2563_s21 }
 0xf0a   :  { %v1295_v12 = vpop.xlane.xlu0 %1294 }
 0xf0b   :  { %2474 = vrcp.f32 %v1295_v12  ;;  %v1322_v16 = vand.u32 2147483648, %v1295_v12  ;;  %v1320_v17 = vand.u32 2147483647, %v1295_v12  ;;  %vm1316_vm4 = vweird.f32 %v1295_v12 }
 0xf0d   :  { %v1323_v7 = vor.u32 1.1754944e-38, %v1322_v16  ;;  %vm1321_vm6 = vcmp.eq.f32.partialorder %v1320_v17, 8.507059e+37 }
 0xf10   :  { %1785 = vrot.lane.b32.xlu2 %v2920_v45, %s2566_s11 }
 0xf11   :  { %v2475_v13 = vpop.eup %2474 }
 0xf12   :  { %v1312_v14 = vmul.f32 %v2475_v13, %v1295_v12  ;;  %vm1317_vm1 = vweird.f32 %v2475_v13  ;;  %v1220_v12 = vld [vmem:[%s3102_s3 + $0x10] sm:$0xff] }
 0xf13   :  { %vm1318_vm5 = vmor %vm1316_vm4, %vm1317_vm1  ;;  %1773 = vmatpush.msra.mxu3 %v1220_v12 }
 0xf14   :  { %v1313_v15 = vsub.f32 1.0, %v1312_v14 }
 0xf16   :  { %v1314_v34 = vmul.f32 %v2475_v13, %v1313_v15 }
 0xf18   :  { %v1315_v18 = vadd.f32 %v2475_v13, %v1314_v34  ;;  %1700 = vrot.lane.b32.xlu2 %v2920_v45, %s2568_s16 }
 0xf1a   :  { %v1319_v19 = vsel %vm1318_vm5, %v2475_v13, %v1315_v18 }
 0xf1b   :  { %v1324_v21 = vsel %vm1321_vm6, %v1323_v7, %v1319_v19 }
 0xf1c   :  { %v1325_v29 = vmul.f32 %v2471_v60, %v1324_v21 }
 0xf1e   :  { %2325 = vmatmul.msk.f32.vlgmr.msrb.gmra.mxu2 %vm223_vm3, %v1325_v29 }
 0xf20   :  { %1811 = vrot.lane.b32.xlu2 %v2938_v62, %s2567_s15 }
 0xf48   :  { %v1453_v22 = vpop.xlane.xlu0 %1452 }
 0xf49   :  { %2476 = vrcp.f32 %v1453_v22  ;;  %v1480_v30 = vand.u32 2147483648, %v1453_v22  ;;  %vm1474_vm8 = vweird.f32 %v1453_v22  ;;  %v1478_v31 = vand.u32 2147483647, %v1453_v22 }
 0xf4b   :  { %v1481_v36 = vor.u32 1.1754944e-38, %v1480_v30  ;;  %vm1479_vm10 = vcmp.eq.f32.partialorder %v1478_v31, 8.507059e+37 }
 0xf4f   :  { %v2477_v23 = vpop.eup %2476 }
 0xf50   :  { %v1470_v24 = vmul.f32 %v2477_v23, %v1453_v22  ;;  %vm1475_vm7 = vweird.f32 %v2477_v23 }
 0xf51   :  { %vm1476_vm9 = vmor %vm1474_vm8, %vm1475_vm7 }
 0xf52   :  { %v1471_v25 = vsub.f32 1.0, %v1470_v24 }
 0xf54   :  { %v1472_v26 = vmul.f32 %v2477_v23, %v1471_v25 }
 0xf56   :  { %v1473_v27 = vadd.f32 %v2477_v23, %v1472_v26 }
 0xf58   :  { %v1477_v35 = vsel %vm1476_vm9, %v2477_v23, %v1473_v27 }
 0xf59   :  { %v1482_v40 = vsel %vm1479_vm10, %v1481_v36, %v1477_v35 }
 0xf5a   :  { %v1483_v42 = vmul.f32 %v2473_v4, %v1482_v40  ;;  %v3009_v6 = vpop.f32.mrf.mxu0 }
 0xf5b   :  { %v1625_v43 = vpop.permute.xlu0 %1624 }
 0xf63   :  { %v1654_v32 = vpop.xlane.xlu2 %1653 }
 0xf64   :  { %v1658_v20 = vsub.f32 %v1650_v10, %v1654_v32 }
 0xf66   :  { %v1660_v38 = vmul.f32 1.442695, %v1658_v20 }
 0xf68   :  { %2478 = vpow2.f32 %v1660_v38 }
 0xf6b   :  { %v1511_v41 = vpop.permute.xlu2 %1510 }
 0xf6c   :  { %1531 = vmatpush.msra.mxu2 %v1511_v41 }
 0xf6d   :  { %2331 = vmatmul.msk.f32.vlgmr.msra.gmra.mxu2 %vm223_vm3, %v1483_v42 }
 0xf6e   :  { %v2479_v44 = vpop.eup %2478  ;;  %2338 = vmatpush.xpose.msk.msrb.mxu2 %vm223_vm3, %v1625_v43 }
 0xf6f   :  { %v1664_v46 = vsel %vm223_vm3, %v2479_v44, 0.0 }
 0xf70   :  { %1665 = vadd.xlane.f32.xlu0 %v1664_v46 }
 0xf73   :  { %v1786_v48 = vpop.permute.xlu2 %1785 }
 0xf74   :  { %2344 = vmatpush.xpose.msk.msrb.mxu0 %vm223_vm3, %v1786_v48 }
 0xf75   :  { %2339 = vmatmul.msk.f32.vlgmr.msrb.gmra.mxu2 %vm223_vm3, %v1623_v39 }
 0xf7b   :  { %v1701_v49 = vpop.permute.xlu2 %1700 }
 0xf7c   :  { %1721 = vmatpush.msra.mxu1 %v1701_v49 }
 0xf7e   :  { %2346 = vmatpush.xpose.msk.msrb.mxu1 %vm223_vm3, %v1814_v33 }
 0xf83   :  { %v1812_v5 = vpop.permute.xlu2 %1811 }
 0xfa1   :  { %v1375_v50 = vpop.f32.mrf.mxu2 }
 0xfa2   :  { %2335 = vmatmul.msk.f32.gmra.mxu0 %vm223_vm3, %v1375_v50 }
 0xfaa   :  { %2345 = vmatmul.msk.f32.vlgmr.msrb.gmra.mxu0 %vm223_vm3, %v1784_v47 }
 0xfe3   :  { %v1666_v51 = vpop.xlane.xlu0 %1665 }
 0xfe4   :  { %2480 = vrcp.f32 %v1666_v51  ;;  %v1681_v55 = vand.u32 2147483648, %v1666_v51  ;;  %v1679_v58 = vand.u32 2147483647, %v1666_v51  ;;  %vm1675_vm13 = vweird.f32 %v1666_v51 }
 0xfe6   :  { %v1682_v61 = vor.u32 1.1754944e-38, %v1681_v55  ;;  %vm1680_vm15 = vcmp.eq.f32.partialorder %v1679_v58, 8.507059e+37 }
 0xfea   :  { %v2481_v52 = vpop.eup %2480 }
 0xfeb   :  { %v1671_v53 = vmul.f32 %v2481_v52, %v1666_v51  ;;  %vm1676_vm11 = vweird.f32 %v2481_v52 }
 0xfec   :  { %vm1677_vm14 = vmor %vm1675_vm13, %vm1676_vm11 }
 0xfed   :  { %v1672_v54 = vsub.f32 1.0, %v1671_v53 }
 0xfef   :  { %v1673_v56 = vmul.f32 %v2481_v52, %v1672_v54 }
 0xff0   :  { %v1533_v59 = vpop.f32.mrf.mxu2 }
 0xff1   :  { %v1674_v60 = vadd.f32 %v2481_v52, %v1673_v56  ;;  %2333 = vmatmul.msk.f32.gmra.mxu3 %vm223_vm3, %v1533_v59 }
 0xff3   :  { %v1678_v63 = vsel %vm1677_vm14, %v2481_v52, %v1674_v60 }
 0xff4   :  { %v1683_v0 = vsel %vm1680_vm15, %v1682_v61, %v1678_v63 }
 0xff5   :  { %v1684_v2 = vmul.f32 %v2479_v44, %v1683_v0 }
 0xff7   :  { %2340 = vmatmul.msk.f32.vlgmr.msra.gmra.mxu1 %vm223_vm3, %v1684_v2 }
 0xff8   :  { %v1647_v28 = vpop.f32.mrf.mxu2 }
 0xff9   :  { %v1651_v3 = vmul.f32 0.35355338, %v1647_v28 }
 0xffb   :  { %v1655_v4 = vsel %vm223_vm3, %v1651_v3, -inf }
 0xffc   :  { %1656 = vmax.xlane.f32.xlu1 %v1655_v4 }
 0xfff   :  { %2347 = vmatmul.msk.f32.vlgmr.msrb.gmra.mxu1 %vm223_vm3, %v1812_v5 }
0x1015   :  { %1726 = vrot.lane.b32.xlu1 %v2938_v62, %s2568_s16 }
0x101f   :  { %v3011_v8 = vpop.f32.mrf.mxu0 }
0x1027   :  { %v1808_v9 = vpop.f32.mrf.mxu0 }
0x1028   :  { %v1839_v10 = vmul.f32 0.35355338, %v1808_v9 }
0x102a   :  { %v1841_v11 = vsel %vm223_vm3, %v1839_v10, -inf }
0x102b   :  { %1842 = vmax.xlane.f32.xlu2 %v1841_v11 }
0x1043   :  { %1889 = vrot.lane.b32.xlu2 %v2920_v45, %s2569_s18 }
0x106f   :  { %v1657_v13 = vpop.xlane.xlu1 %1656 }
0x1070   :  { %v1659_v15 = vsub.f32 %v1651_v3, %v1657_v13  ;;  %v1221_v13 = vld [vmem:[%s3102_s3 + $0x18] sm:$0xff] }
0x1071   :  { %1962 = vmatpush.msra.mxu1 %v1221_v13 }
0x1072   :  { %v1662_v16 = vmul.f32 1.442695, %v1659_v15 }
0x1074   :  { %v1723_v14 = vpop.f32.mrf.mxu1  ;;  %2482 = vpow2.f32 %v1662_v16  ;;  %v1559_v16 = vpop.f32.mrf.mxu3 }
0x1075   :  { %2342 = vmatmul.msk.f32.vlgmr.msra.gmra.mxu3 %vm223_vm3, %v1723_v14 }
0x107a   :  { %v2483_v7 = vpop.eup %2482 }
0x107b   :  { %v1667_v21 = vsel %vm223_vm3, %v2483_v7, 0.0 }
0x107c   :  { %v1836_v34 = vpop.f32.mrf.mxu1 }
0x107d   :  { %v1840_v17 = vmul.f32 0.35355338, %v1836_v34  ;;  %v1562_v34 = vpop.f32.mrf.mxu3 }
0x107f   :  { %v1844_v18 = vsel %vm223_vm3, %v1840_v17, -inf }
0x1080   :  { %1845 = vmax.xlane.f32.xlu0 %v1844_v18  ;;  %v1589_v18 = vadd.f32 %v3009_v6, %v1559_v16 }
0x1087   :  { %v1727_v19 = vpop.permute.xlu1 %1726 }
0x1088   :  { %1747 = vmatpush.msra.mxu2 %v1727_v19  ;;  %1668 = vadd.xlane.f32.xlu0 %v1667_v21  ;;  %v2412_v19 = vld [vmem:[%s3103_s8] ss:$0 sm:$0xff] }
0x109e   :  { %v1843_v45 = vpop.xlane.xlu2 %1842 }
0x109f   :  { %v1847_v24 = vsub.f32 %v1839_v10, %v1843_v45 }
0x10a1   :  { %v1849_v26 = vmul.f32 1.442695, %v1847_v24 }
0x10a6   :  { %v1890_v29 = vpop.permute.xlu2 %1889 }
0x10a7   :  { %1910 = vmatpush.msrb.mxu2 %v1890_v29 }
0x10f3   :  { %v1846_v22 = vpop.xlane.xlu0 %1845 }
0x10f4   :  { %v1848_v23 = vsub.f32 %v1840_v17, %v1846_v22 }
0x10f6   :  { %v1851_v25 = vmul.f32 1.442695, %v1848_v23  ;;  %v1592_v23 = vadd.f32 %v3011_v8, %v1562_v34 }
0x10f8   :  { %2484 = vpow2.f32 %v1851_v25  ;;  %v1775_v17 = vpop.f32.mrf.mxu3 }
0x10fb   :  { %v1669_v27 = vpop.xlane.xlu0 %1668 }
0x10fc   :  { %2486 = vrcp.f32 %v1669_v27  ;;  %v1696_v38 = vand.u32 2147483648, %v1669_v27  ;;  %v1694_v40 = vand.u32 2147483647, %v1669_v27  ;;  %vm1690_vm1 = vweird.f32 %v1669_v27 }
0x10fd   :  { %2488 = vpow2.f32 %v1849_v26 }
0x10fe   :  { %v2485_v30 = vpop.eup %2484  ;;  %v1697_v43 = vor.u32 1.1754944e-38, %v1696_v38  ;;  %vm1695_vm5 = vcmp.eq.f32.partialorder %v1694_v40, 8.507059e+37 }
0x10ff   :  { %v1856_v31 = vsel %vm223_vm3, %v2485_v30, 0.0 }
0x1100   :  { %1857 = vadd.xlane.f32.xlu0 %v1856_v31 }
0x1102   :  { %v2487_v32 = vpop.eup %2486 }
0x1103   :  { %v1686_v20 = vmul.f32 %v2487_v32, %v1669_v27  ;;  %v2489_v35 = vpop.eup %2488  ;;  %vm1691_vm0 = vweird.f32 %v2487_v32 }
0x1104   :  { %v1853_v41 = vsel %vm223_vm3, %v2489_v35, 0.0  ;;  %vm1692_vm4 = vmor %vm1690_vm1, %vm1691_vm0 }
0x1105   :  { %v1687_v36 = vsub.f32 1.0, %v1686_v20 }
0x1107   :  { %v1688_v39 = vmul.f32 %v2487_v32, %v1687_v36 }
0x1108   :  { %1854 = vadd.xlane.f32.xlu0 %v1853_v41 }
0x1109   :  { %v1689_v42 = vadd.f32 %v2487_v32, %v1688_v39 }
0x110b   :  { %v1693_v44 = vsel %vm1692_vm4, %v2487_v32, %v1689_v42  ;;  %v2039_v42 = vld [vmem:[%s3104_s14 + $0x18] sm:$0xff] }
0x110c   :  { %v1698_v46 = vsel %vm1695_vm5, %v1697_v43, %v1693_v44  ;;  %v2038_v43 = vld [vmem:[%s3104_s14 + $0x10] sm:$0xff]  ;;  %v2037_v44 = vld [vmem:[%s3104_s14 + $0x8] sm:$0xff] }
0x110d   :  { %v1699_v47 = vmul.f32 %v2483_v7, %v1698_v46  ;;  %v1781_v7 = vadd.f32 %v1775_v17, %v1589_v18  ;;  %v2036_v46 = vld [vmem:[%s3104_s14] sm:$0xff]  ;;  %v2077_v18 = vld [vmem:[%s3105_s19 + $0x10] sm:$0xff] }
0x110f   :  { %2341 = vmatmul.msk.f32.vlgmr.msra.gmra.mxu2 %vm223_vm3, %v1699_v47 }
0x1110   :  { %2062 = vmatpush.msra.mxu2 %v2039_v42 }
0x1112   :  { %2063 = vmatpush.msra.mxu2 %v2038_v43 }
0x1114   :  { %2064 = vmatpush.msra.mxu2 %v2037_v44 }
0x1116   :  { %2065 = vmatpush.msra.mxu2 %v2036_v46 }
0x111c   :  { %1915 = vrot.lane.b32.xlu0 %v2938_v62, %s2569_s18 }
0x1173   :  { %v1858_v48 = vpop.xlane.xlu0 %1857 }
0x1174   :  { %2490 = vrcp.f32 %v1858_v48  ;;  %v1885_v56 = vand.u32 2147483648, %v1858_v48  ;;  %vm1879_vm7 = vweird.f32 %v1858_v48  ;;  %v1883_v59 = vand.u32 2147483647, %v1858_v48 }
0x1176   :  { %v1886_v0 = vor.u32 1.1754944e-38, %v1885_v56  ;;  %vm1884_vm11 = vcmp.eq.f32.partialorder %v1883_v59, 8.507059e+37 }
0x117a   :  { %v2491_v49 = vpop.eup %2490 }
0x117b   :  { %v1875_v33 = vmul.f32 %v2491_v49, %v1858_v48  ;;  %v1855_v50 = vpop.xlane.xlu0 %1854  ;;  %vm1880_vm6 = vweird.f32 %v2491_v49 }
0x117c   :  { %2492 = vrcp.f32 %v1855_v50  ;;  %v1870_v60 = vand.u32 2147483648, %v1855_v50  ;;  %vm1881_vm8 = vmor %vm1879_vm7, %vm1880_vm6  ;;  %v1868_v62 = vand.u32 2147483647, %v1855_v50  ;;  %vm1864_vm10 = vweird.f32 %v1855_v50 }
0x117d   :  { %v1876_v51 = vsub.f32 1.0, %v1875_v33  ;;  %v2082_v33 = vld [vmem:[%s3105_s19 + $0x38] sm:$0xff] }
0x117e   :  { %v1871_v28 = vor.u32 1.1754944e-38, %v1870_v60  ;;  %vm1869_vm14 = vcmp.eq.f32.partialorder %v1868_v62, 8.507059e+37  ;;  %2101 = vmatpush.msrb.mxu3 %v2082_v33 }
0x117f   :  { %v1877_v52 = vmul.f32 %v2491_v49, %v1876_v51  ;;  %v2080_v51 = vld [vmem:[%s3105_s19 + $0x28] sm:$0xff] }
0x1181   :  { %v1878_v55 = vadd.f32 %v2491_v49, %v1877_v52 }
0x1182   :  { %v2493_v53 = vpop.eup %2492 }
0x1183   :  { %v1860_v54 = vmul.f32 %v2493_v53, %v1855_v50  ;;  %vm1865_vm9 = vweird.f32 %v2493_v53  ;;  %v1882_v63 = vsel %vm1881_vm8, %v2491_v49, %v1878_v55  ;;  %v2081_v50 = vld [vmem:[%s3105_s19 + $0x30] sm:$0xff] }
0x1184   :  { %vm1866_vm13 = vmor %vm1864_vm10, %vm1865_vm9  ;;  %v1887_v3 = vsel %vm1884_vm11, %v1886_v0, %v1882_v63  ;;  %2102 = vmatpush.msrb.mxu3 %v2081_v50  ;;  %vm2175_vm11 = vcmask 130048  }
0x1185   :  { %v1861_v58 = vsub.f32 1.0, %v1860_v54  ;;  %v1888_v11 = vmul.f32 %v2485_v30, %v1887_v3  ;;  %v2079_v54 = vld [vmem:[%s3105_s19 + $0x20] sm:$0xff] }
0x1186   :  { %2103 = vmatpush.msrb.mxu3 %v2080_v51 }
0x1187   :  { %v1862_v61 = vmul.f32 %v2493_v53, %v1861_v58  ;;  %v2078_v58 = vld [vmem:[%s3105_s19 + $0x18] sm:$0xff] }
0x1188   :  { %2104 = vmatpush.msrb.mxu3 %v2079_v54 }
0x1189   :  { %v1863_v2 = vadd.f32 %v2493_v53, %v1862_v61 }
0x118a   :  { %2105 = vmatpush.msrb.mxu3 %v2078_v58 }
0x118b   :  { %v1867_v4 = vsel %vm1866_vm13, %v2493_v53, %v1863_v2 }
0x118c   :  { %v1872_v5 = vsel %vm1869_vm14, %v1871_v28, %v1867_v4  ;;  %v2413_v28 = vld [vmem:[%s3106_s24] ss:$0 sm:$0xff]  ;;  %2106 = vmatpush.msrb.mxu3 %v2077_v18 }
0x118d   :  { %v1873_v9 = vmul.f32 %v2489_v35, %v1872_v5 }
0x118e   :  { %v1916_v10 = vpop.permute.xlu0 %1915 }
0x118f   :  { %2348 = vmatmul.msk.f32.vlgmr.msrb.gmra.mxu2 %vm223_vm3, %v1873_v9  ;;  %1936 = vmatpush.msra.mxu0 %v1916_v10  ;;  %v2414_v9 = vld [vmem:[%s3107_s30] ss:$0 sm:$0xff] }
0x1190   :  { %2349 = vmatmul.msk.f32.vlgmr.msra.gmra.mxu0 %vm223_vm3, %v1888_v11 }
0x1192   :  { %v1749_v12 = vpop.f32.mrf.mxu2 }
0x1193   :  { %2343 = vmatmul.msk.f32.gmra.mxu3 %vm223_vm3, %v1749_v12 }
0x120d   :  { %v1938_v15 = vpop.f32.mrf.mxu0 }
0x1212   :  { %v1912_v14 = vpop.f32.mrf.mxu2 }
0x1213   :  { %2350 = vmatmul.msk.f32.vlgmr.msra.gmra.mxu1 %vm223_vm3, %v1912_v14 }
0x1216   :  { %v1778_v22 = vpop.f32.mrf.mxu3 }
0x1217   :  { %v1782_v25 = vadd.f32 %v1778_v22, %v1592_v23 }
0x121b   :  { %2351 = vmatmul.msk.f32.gmra.mxu1 %vm223_vm3, %v1938_v15 }
0x1290   :  { %v1964_v21 = vpop.f32.mrf.mxu1 }
0x1291   :  { %v1970_v45 = vadd.f32 %v1964_v21, %v1781_v7  ;;  %v2076_v7 = vld [vmem:[%s3105_s19 + $0x8] sm:$0xff]  ;;  %v2415_v21 = vld [vmem:[%s3108_s6] ss:$0 sm:$0xff] }
0x1292   :  { %2107 = vmatpush.msrb.mxu3 %v2076_v7 }
0x1293   :  { %v1976_v29 = vadd.f32 %v2412_v19, %v1970_v45 }
0x1295   :  { %v1978_v24 = vadd.f32 %v1976_v29, %v2913_v37 }
0x1297   :  { %v1982_v26 = vsel %vm186_vm2, %v1978_v24, 0.0 }
0x1298   :  { %1983 = vadd.xlane.f32.xlu1 %v1982_v26  ;;  %v1967_v27 = vpop.f32.mrf.mxu1  ;;  %v2416_v26 = vld [vmem:[%s3109_s20] ss:$0 sm:$0xff] }
0x1299   :  { %v1971_v30 = vadd.f32 %v1967_v27, %v1782_v25 }
0x129b   :  { %v1977_v31 = vadd.f32 %v2412_v19, %v1971_v30  ;;  %v2075_v19 = vld [vmem:[%s3105_s19] sm:$0xff] }
0x129c   :  { %2108 = vmatpush.msrb.mxu3 %v2075_v19 }
0x129d   :  { %v1979_v6 = vadd.f32 %v1977_v31, %v2929_v57 }
0x129f   :  { %v1985_v32 = vsel %vm186_vm2, %v1979_v6, 0.0 }
0x12a0   :  { %1986 = vadd.xlane.f32.xlu2 %v1985_v32 }
0x130b   :  { %v1984_v20 = vpop.xlane.xlu1 %1983 }
0x130c   :  { %v1988_v8 = vmul.f32 %v1984_v20, %v2871_v1 }
0x130e   :  { %v1990_v35 = vsub.f32 %v1978_v24, %v1988_v8 }
0x1310   :  { %v1992_v37 = vmul.f32 %v1990_v35, %v1990_v35 }
0x1312   :  { %v1994_v36 = vsel %vm186_vm2, %v1992_v37, 0.0 }
0x1313   :  { %1995 = vadd.xlane.f32.xlu0 %v1994_v36  ;;  %v1987_v38 = vpop.xlane.xlu2 %1986 }
0x1314   :  { %v1989_v39 = vmul.f32 %v1987_v38, %v2871_v1 }
0x1316   :  { %v1991_v40 = vsub.f32 %v1979_v6, %v1989_v39 }
0x1318   :  { %v1993_v57 = vmul.f32 %v1991_v40, %v1991_v40 }
0x131a   :  { %v1997_v41 = vsel %vm186_vm2, %v1993_v57, 0.0 }
0x131b   :  { %1998 = vadd.xlane.f32.xlu1 %v1997_v41 }
0x1386   :  { %v1996_v47 = vpop.xlane.xlu0 %1995 }
0x1387   :  { %v2000_v48 = vmul.f32 %v1996_v47, %v2871_v1 }
0x1389   :  { %v2002_v49 = vadd.f32 1e-05, %v2000_v48 }
0x138b   :  { %2494 = vrsqrt.f32 %v2002_v49  ;;  %vm2010_vm15 = vweird.f32 %v2002_v49 }
0x138e   :  { %v1999_v52 = vpop.xlane.xlu1 %1998 }
0x138f   :  { %v2001_v53 = vmul.f32 %v1999_v52, %v2871_v1 }
0x1391   :  { %v2495_v55 = vpop.eup %2494  ;;  %v2003_v56 = vadd.f32 1e-05, %v2001_v53 }
0x1392   :  { %v2005_v59 = vmul.f32 %v2495_v55, %v2002_v49  ;;  %vm2011_vm3 = vweird.f32 %v2495_v55 }
0x1393   :  { %2496 = vrsqrt.f32 %v2003_v56  ;;  %vm2012_vm0 = vmor %vm2010_vm15, %vm2011_vm3  ;;  %vm2020_vm4 = vweird.f32 %v2003_v56 }
0x1394   :  { %v2006_v60 = vmul.f32 %v2495_v55, %v2005_v59 }
0x1396   :  { %v2007_v61 = vmul.f32 0.5, %v2006_v60 }
0x1398   :  { %v2008_v62 = vsub.f32 1.5, %v2007_v61 }
0x1399   :  { %v2497_v63 = vpop.eup %2496 }
0x139a   :  { %v2009_v0 = vmul.f32 %v2495_v55, %v2008_v62  ;;  %v2015_v2 = vmul.f32 %v2497_v63, %v2003_v56  ;;  %vm2021_vm1 = vweird.f32 %v2497_v63 }
0x139b   :  { %vm2022_vm5 = vmor %vm2020_vm4, %vm2021_vm1 }
0x139c   :  { %v2013_v3 = vsel %vm2012_vm0, %v2495_v55, %v2009_v0  ;;  %v2016_v4 = vmul.f32 %v2497_v63, %v2015_v2  ;;  %v2417_v0 = vld [vmem:[%s3110_s22] ss:$0 sm:$0xff] }
0x139d   :  { %v2024_v5 = vmul.f32 %v2013_v3, %v1990_v35 }
0x139e   :  { %v2017_v10 = vmul.f32 0.5, %v2016_v4 }
0x139f   :  { %v2029_v11 = vmul.f32 %v2413_v28, %v2024_v5  ;;  %v2418_v5 = vld [vmem:[%s2710_s13] ss:$0 sm:$0xff]  ;;  %s2571_s13 = smov [#allocation2]  }
0x13a0   :  { %v2018_v12 = vsub.f32 1.5, %v2017_v10  ;;  %s2236_s26 = sshll.u32 %s2571_s13, 4  ;;  %s2237_s26 = int_to_ptr.vmem [resolvable:$true] %s2236_s26 }
0x13a1   :  { %v2034_v13 = vadd.f32 %v2414_v9, %v2029_v11 }
0x13a2   :  { %v2019_v14 = vmul.f32 %v2497_v63, %v2018_v12  ;;  %v2174_v12 = vld [vmem:[%s3111_s23] sm:$0x3] }
0x13a3   :  { %2352 = vmatmul.msk.f32.vlgmr.msra.gmra.mxu2 %vm186_vm2, %v2034_v13 }
0x13a4   :  { %v2023_v15 = vsel %vm2022_vm5, %v2497_v63, %v2019_v14  ;;  %v2201_v14 = vld [vmem:[%s2715_s12 + $0x10] sm:$0xff] }
0x13a5   :  { %v2025_v16 = vmul.f32 %v2023_v15, %v1991_v40  ;;  %v2200_v15 = vld [vmem:[%s2715_s12 + $0x8] sm:$0xff] }
0x13a7   :  { %v2030_v34 = vmul.f32 %v2413_v28, %v2025_v16  ;;  %v2199_v16 = vld [vmem:[%s2715_s12] sm:$0xff] }
0x13a9   :  { %v2035_v17 = vadd.f32 %v2414_v9, %v2030_v34 }
0x13ab   :  { %2353 = vmatmul.msk.f32.gmra.mxu2 %vm186_vm2, %v2035_v17 }
0x1426   :  { %v2067_v45 = vpop.f32.mrf.mxu2 }
0x1427   :  { %v2068_v29 = vadd.f32 %v2415_v21, %v2067_v45 }
0x1429   :  { %v2073_v22 = vmax.f32 %v2068_v29, 0.0 }
0x142b   :  { %2354 = vmatmul.msk.f32.vlgmr.msrb.gmra.mxu3 %vm1093_vm12, %v2073_v22 }
0x142e   :  { %v2070_v23 = vpop.f32.mrf.mxu2 }
0x142f   :  { %v2071_v24 = vadd.f32 %v2415_v21, %v2070_v23 }
0x1431   :  { %v2074_v25 = vmax.f32 %v2071_v24, 0.0 }
0x1433   :  { %2355 = vmatmul.msk.f32.gmra.mxu3 %vm1093_vm12, %v2074_v25 }
0x14ae   :  { %v2110_v27 = vpop.f32.mrf.mxu3 }
0x14af   :  { %v2111_v30 = vadd.f32 %v2416_v26, %v2110_v27 }
0x14b1   :  { %v2116_v31 = vadd.f32 %v2111_v30, %v2034_v13  ;;  %v2202_v13 = vld [vmem:[%s2715_s12 + $0x18] sm:$0xff]  ;;  %s2518_s12 = scalar_lea.hbm %s2725_s4, 2 }
0x14b2   :  { %p2520_p2 = scmp.lt.s32.totalorder %s2518_s12, %s2516_s2 }
0x14b3   :  { %v2120_v6 = vsel %vm186_vm2, %v2116_v31, 0.0 }
0x14b4   :  { %2121 = vadd.xlane.f32.xlu0 %v2120_v6  ;;  %p2521_p3 = por %p2520_p2, %p2519_p1 }
0x14b6   :  { %v2113_v32 = vpop.f32.mrf.mxu3  ;;  %p2522_p4 = pnand %p2521_p3, %p2517_p0 }
0x14b7   :  { %v2114_v20 = vadd.f32 %v2416_v26, %v2113_v32 }
0x14b9   :  { %v2117_v8 = vadd.f32 %v2114_v20, %v2035_v17  ;;  %v2419_v17 = vld [vmem:[%s2720_s27] ss:$0 sm:$0xff] }
0x14bb   :  { %v2123_v35 = vsel %vm186_vm2, %v2117_v8, 0.0 }
0x14bc   :  { %2124 = vadd.xlane.f32.xlu2 %v2123_v35 }
0x1527   :  { %v2122_v37 = vpop.xlane.xlu0 %2121 }
0x1528   :  { %v2126_v36 = vmul.f32 %v2122_v37, %v2871_v1 }
0x152a   :  { %v2128_v38 = vsub.f32 %v2116_v31, %v2126_v36 }
0x152c   :  { %v2130_v39 = vmul.f32 %v2128_v38, %v2128_v38 }
0x152e   :  { %v2132_v40 = vsel %vm186_vm2, %v2130_v39, 0.0 }
0x152f   :  { %2133 = vadd.xlane.f32.xlu2 %v2132_v40  ;;  %v2125_v57 = vpop.xlane.xlu2 %2124 }
0x1530   :  { %v2127_v41 = vmul.f32 %v2125_v57, %v2871_v1 }
0x1532   :  { %v2129_v42 = vsub.f32 %v2117_v8, %v2127_v41 }
0x1534   :  { %v2131_v43 = vmul.f32 %v2129_v42, %v2129_v42 }
0x1536   :  { %v2135_v44 = vsel %vm186_vm2, %v2131_v43, 0.0 }
0x1537   :  { %2136 = vadd.xlane.f32.xlu1 %v2135_v44 }
0x15a2   :  { %v2134_v46 = vpop.xlane.xlu2 %2133 }
0x15a3   :  { %v2138_v47 = vmul.f32 %v2134_v46, %v2871_v1 }
0x15a5   :  { %v2140_v48 = vadd.f32 1e-05, %v2138_v47 }
0x15a7   :  { %2498 = vrsqrt.f32 %v2140_v48  ;;  %vm2148_vm6 = vweird.f32 %v2140_v48 }
0x15aa   :  { %v2137_v49 = vpop.xlane.xlu1 %2136 }
0x15ab   :  { %v2139_v33 = vmul.f32 %v2137_v49, %v2871_v1 }
0x15ad   :  { %v2499_v50 = vpop.eup %2498  ;;  %v2141_v51 = vadd.f32 1e-05, %v2139_v33 }
0x15ae   :  { %v2143_v52 = vmul.f32 %v2499_v50, %v2140_v48  ;;  %vm2149_vm12 = vweird.f32 %v2499_v50 }
0x15af   :  { %2500 = vrsqrt.f32 %v2141_v51  ;;  %vm2150_vm7 = vmor %vm2148_vm6, %vm2149_vm12  ;;  %vm2158_vm9 = vweird.f32 %v2141_v51 }
0x15b0   :  { %v2144_v53 = vmul.f32 %v2499_v50, %v2143_v52 }
0x15b2   :  { %v2145_v54 = vmul.f32 0.5, %v2144_v53 }
0x15b4   :  { %v2146_v55 = vsub.f32 1.5, %v2145_v54 }
0x15b5   :  { %v2501_v56 = vpop.eup %2500 }
0x15b6   :  { %v2153_v58 = vmul.f32 %v2501_v56, %v2141_v51  ;;  %v2147_v59 = vmul.f32 %v2499_v50, %v2146_v55  ;;  %vm2159_vm8 = vweird.f32 %v2501_v56 }
0x15b7   :  { %vm2160_vm10 = vmor %vm2158_vm9, %vm2159_vm8 }
0x15b8   :  { %v2154_v60 = vmul.f32 %v2501_v56, %v2153_v58  ;;  %v2151_v62 = vsel %vm2150_vm7, %v2499_v50, %v2147_v59 }
0x15b9   :  { %v2162_v2 = vmul.f32 %v2151_v62, %v2128_v38 }
0x15ba   :  { %v2155_v61 = vmul.f32 0.5, %v2154_v60 }
0x15bb   :  { %v2167_v9 = vmul.f32 %v2417_v0, %v2162_v2 }
0x15bc   :  { %v2156_v1 = vsub.f32 1.5, %v2155_v61 }
0x15bd   :  { %v2172_v11 = vadd.f32 %v2418_v5, %v2167_v9 }
0x15be   :  { %v2157_v63 = vmul.f32 %v2501_v56, %v2156_v1 }
0x15c0   :  { %v2161_v28 = vsel %vm2160_vm10, %v2501_v56, %v2157_v63 }
0x15c1   :  { %v2163_v3 = vmul.f32 %v2161_v28, %v2129_v42 }
0x15c3   :  { %v2168_v4 = vmul.f32 %v2417_v0, %v2163_v3 }
0x15c5   :  { %v2173_v10 = vadd.f32 %v2418_v5, %v2168_v4 }
0x15c7   :  { %2193 = vmatpush.msrb.mxu0 %v2173_v10 }
0x15c9   :  { %2194 = vmatpush.msrb.mxu0 %v2172_v11 }
0x15ca   :  { %2356 = vmatmul.msk.f32.vlgmr.msrb.gmra.mxu0 %vm2175_vm11, %v2174_v12 }
0x15cb   :  { %2222 = vmatpush.msra.mxu0 %v2202_v13 }
0x15cd   :  { %2223 = vmatpush.msra.mxu0 %v2201_v14 }
0x15cf   :  { %2224 = vmatpush.msra.mxu0 %v2200_v15 }
0x15d1   :  { %2225 = vmatpush.msra.mxu0 %v2199_v16 }
0x1647   :  { %v2196_v34 = vpop.f32.mrf.mxu0 }
0x1648   :  { %2357 = vmatmul.msk.f32.vlgmr.msra.gmra.mxu0 %vm186_vm2, %v2196_v34 }
0x16c5   :  { %v2227_v18 = vpop.f32.mrf.mxu0 }
0x16c6   :  { %v2228_v7 = vadd.f32 %v2419_v17, %v2227_v18 }
0x16c8   :  { %2230 = vst [vmem:[#allocation2] sm:$0x3] %v2228_v7 }
0x16c9   :  { %2525 = shalt.err (!%p2522_p4)
}
0x16ca   :  { %2241 = dma.vmem_to_hbm [thread:$0]  %s2237_s26, 32, %s2239_s28, [#allocation3]  }
0x16cb   :  { %2526 = dma.done.wait [#allocation3], 32  }
0x16cc   :  { %2527 = vsyncadd [#allocation3], 4294967264 }
0x16cd   :  { %2246 = vsyncpa [#allocation3], 1 }

</bundles_post_ra>
